<compile_context>
chip_gen: v6e
topology: v6e:2x2x1
jax: 0.10.0
libtpu: 0.0.40
codegen_flags: <defaults>
</compile_context>

<pallas_src>
import jax
import jax.numpy as jnp
from jax import lax
from jax.experimental import pallas as pl
from jax.experimental.pallas import tpu as pltpu

GROUPS = 8
EPS = 1e-5


# ------------- kernel 1: x + 1x1x1conv(t)  ->  GroupNorm(8)  ->  SiLU -------------
def _fuse_kernel(x_ref, t_ref, wt_ref, bt_ref, pmat_ref, g_ref, b_ref, o_ref):
    x = x_ref[0]                                    # (C, N)   f32
    tt = t_ref[0]                                   # (Ct, N)  bf16
    # 1x1x1 Conv3d(t) == per-voxel channel-mixing matmul (bf16 in, f32 acc).
    y = x + jnp.dot(wt_ref[...], tt,
                    preferred_element_type=jnp.float32) + bt_ref[...]

    # GroupNorm(8): reduce over voxels first (cheap lane reduction), then
    # aggregate channels within each group with a tiny (C,C)@(C,1) matmul.
    # Stats stay in f32 (VPU/XLU path), matmul inputs are the small f32 sums.
    n = jnp.float32(y.shape[1])
    sy = jnp.sum(y, axis=1, keepdims=True)          # (C, 1)
    sy2 = jnp.sum(y * y, axis=1, keepdims=True)     # (C, 1)
    mean = jnp.dot(pmat_ref[...], sy, preferred_element_type=jnp.float32,
                   precision=lax.Precision.HIGHEST) / n
    mean2 = jnp.dot(pmat_ref[...], sy2, preferred_element_type=jnp.float32,
                    precision=lax.Precision.HIGHEST) / n
    var = jnp.maximum(mean2 - mean * mean, 0.0)
    z = (y - mean) * lax.rsqrt(var + EPS) * g_ref[...] + b_ref[...]

    # SiLU, emitted in bf16 (halves the HBM handoff to the tconv kernel).
    o_ref[0] = (z * jax.nn.sigmoid(z)).astype(o_ref.dtype)


def fused_add_gn_silu(x2d, t2d, wt, bt, pmat, gamma, beta):
    # TODO(synk): for very large C*N (e.g. C=320, 32^3 voxels) this needs a
    # two-pass, N-tiled GroupNorm (stats pass + normalize pass) to stay inside
    # VMEM; the full-N-per-batch block here is fine for small/medium shapes.
    B, C, N = x2d.shape
    Ct = t2d.shape[1]
    return pl.pallas_call(
        _fuse_kernel,
        out_shape=jax.ShapeDtypeStruct((B, C, N), jnp.bfloat16),
        grid_spec=pltpu.PrefetchScalarGridSpec(
            num_scalar_prefetch=0,
            grid=(B,),
            in_specs=[
                pl.BlockSpec((1, C, N), lambda b: (b, 0, 0)),
                pl.BlockSpec((1, Ct, N), lambda b: (b, 0, 0)),
                pl.BlockSpec((C, Ct), lambda b: (0, 0)),
                pl.BlockSpec((C, 1), lambda b: (0, 0)),
                pl.BlockSpec((C, C), lambda b: (0, 0)),
                pl.BlockSpec((C, 1), lambda b: (0, 0)),
                pl.BlockSpec((C, 1), lambda b: (0, 0)),
            ],
            out_specs=pl.BlockSpec((1, C, N), lambda b: (b, 0, 0)),
        ),
        compiler_params=pltpu.CompilerParams(
            dimension_semantics=("parallel",),
            vmem_limit_bytes=64 * 1024 * 1024),
    )(x2d, t2d, wt, bt, pmat, gamma, beta)


# ------------- kernel 2: ConvTranspose3d via output-parity decomposition ----------
# One matmul per (batch, N-tile):  (8*Cout, 8*Cin) @ (8*Cin, TN)
# Rows of the weight are (parity, out-channel); columns are (shift, in-channel),
# with the 8 shifts being h[d+sd, h+sh, w+sw], (sd,sh,sw) in {0,1}^3.
def _tconv_kernel(cols_ref, w_ref, b_ref, o_ref):
    o_ref[0] = (jnp.dot(w_ref[...], cols_ref[0],
                        preferred_element_type=jnp.float32)
                + b_ref[...]).astype(o_ref.dtype)


def _pick_n_tile(n, max_tile=2048):
    """Largest lane-dense (multiple-of-128) divisor of n up to max_tile."""
    if n % 128 != 0:
        return n
    t = 128
    while t * 2 <= max_tile and n % (t * 2) == 0:
        t *= 2
    return t


def tconv_parity_matmul(cols, w_all, b_all):
    B, K, N = cols.shape            # K = 8 * Cin
    M = w_all.shape[0]              # M = 8 * Cout
    tn = _pick_n_tile(N)
    return pl.pallas_call(
        _tconv_kernel,
        out_shape=jax.ShapeDtypeStruct((B, M, N), jnp.float32),
        grid_spec=pltpu.PrefetchScalarGridSpec(
            num_scalar_prefetch=0,
            grid=(B, N // tn),
            in_specs=[
                pl.BlockSpec((1, K, tn), lambda b, n: (b, 0, n)),
                pl.BlockSpec((M, K), lambda b, n: (0, 0)),
                pl.BlockSpec((M, 1), lambda b, n: (0, 0)),
            ],
            out_specs=pl.BlockSpec((1, M, tn), lambda b, n: (b, 0, n)),
        ),
        compiler_params=pltpu.CompilerParams(
            dimension_semantics=("parallel", "parallel"),
            vmem_limit_bytes=64 * 1024 * 1024),
    )(cols, w_all, b_all)


# ------------------------------- module wrapper ------------------------------------
class SpatialUpTimeBlockPallas:
    def __init__(self, x_in_dim, t_in_dim, out_dim, key):
        assert x_in_dim % GROUPS == 0
        ks = jax.random.split(key, 6)
        s = 0.1
        self.C, self.Ct, self.Cout = x_in_dim, t_in_dim, out_dim

        # t_conv = Conv3d(t_in, x_in, 1): weight (x_in, t_in), bias (x_in,)
        self.wt = s * jax.random.normal(ks[0], (x_in_dim, t_in_dim), jnp.float32)
        self.bt = s * jax.random.normal(ks[1], (x_in_dim,), jnp.float32)
        # GroupNorm affine params
        self.gamma = 1.0 + s * jax.random.normal(ks[2], (x_in_dim,), jnp.float32)
        self.beta = s * jax.random.normal(ks[3], (x_in_dim,), jnp.float32)
        # ConvTranspose3d weight in PyTorch layout (in, out, kD, kH, kW), bias (out,)
        self.wct = s * jax.random.normal(ks[4], (x_in_dim, out_dim, 3, 3, 3),
                                         jnp.float32)
        self.bct = s * jax.random.normal(ks[5], (out_dim,), jnp.float32)

        # group-averaging matrix used by the GroupNorm kernel
        cg = x_in_dim // GROUPS
        gid = jnp.arange(x_in_dim) // cg
        self.pmat = (gid[:, None] == gid[None, :]).astype(jnp.float32) / cg

        # bf16 copy of the 1x1x1 conv weight for the MXU.
        self.wt_bf16 = self.wt.astype(jnp.bfloat16)

        # Parity-decomposed ConvTranspose weight (8*Cout, 8*Cin):
        #   block(p, s) = Wct[:, :, kd, kh, kw]^T where (per axis)
        #     parity 0 (even):  shift 0 -> kernel tap 1
        #     parity 1 (odd):   shift 0 -> tap 2,  shift 1 -> tap 0
        axis_taps = {0: [(0, 1)], 1: [(0, 2), (1, 0)]}
        blocks = jnp.zeros((8, out_dim, 8, x_in_dim), jnp.float32)
        for pd in (0, 1):
            for ph in (0, 1):
                for pw in (0, 1):
                    p = pd * 4 + ph * 2 + pw
                    for sd, kd in axis_taps[pd]:
                        for sh, kh in axis_taps[ph]:
                            for sw, kw in axis_taps[pw]:
                                sidx = sd * 4 + sh * 2 + sw
                                blocks = blocks.at[p, :, sidx, :].set(
                                    self.wct[:, :, kd, kh, kw].T)
        self.w_all = blocks.reshape(8 * out_dim, 8 * x_in_dim).astype(jnp.bfloat16)
        # every parity row gets the full output bias
        self.b_all = jnp.tile(self.bct, 8).reshape(-1, 1)

    def __call__(self, x, t):
        B, C, D, H, W = x.shape
        N = D * H * W

        # --- kernel 1: x + t_conv(t), GroupNorm(8), SiLU (bf16 out) ---
        h = fused_add_gn_silu(
            x.reshape(B, C, N),
            t.reshape(B, self.Ct, N).astype(jnp.bfloat16),
            self.wt_bf16, self.bt.reshape(-1, 1), self.pmat,
            self.gamma.reshape(-1, 1), self.beta.reshape(-1, 1),
        ).reshape(B, C, D, H, W)

        # --- host glue: the 8 shifted copies of h needed by the parity matmul ---
        hp = jnp.pad(h, ((0, 0), (0, 0), (0, 1), (0, 1), (0, 1)))
        cols = jnp.stack(
            [hp[:, :, sd:sd + D, sh:sh + H, sw:sw + W]
             for sd in (0, 1) for sh in (0, 1) for sw in (0, 1)],
            axis=1).reshape(B, 8 * C, N)                       # bf16, 8x h bytes

        # --- kernel 2: all 8 output parities in one matmul per (batch, N-tile) ---
        par = tconv_parity_matmul(cols, self.w_all, self.b_all)  # (B, 8*Cout, N) f32

        # --- host glue: interleave parities into the (2D, 2H, 2W) output grid ---
        out = par.reshape(B, 2, 2, 2, self.Cout, D, H, W)
        out = out.transpose(0, 4, 5, 1, 6, 2, 7, 3)
        return out.reshape(B, self.Cout, 2 * D, 2 * H, 2 * W)


# ------------------- pure-JAX f32 reference for validation -------------------------
def reference(x, t, m):
    HI = lax.Precision.HIGHEST
    y = x + jnp.einsum('oc,bcdhw->bodhw', m.wt, t, precision=HI) \
          + m.bt[None, :, None, None, None]
    B, C, D, H, W = y.shape
    cg = C // GROUPS
    yg = y.reshape(B, GROUPS, cg, D, H, W)
    mean = yg.mean(axis=(2, 3, 4, 5), keepdims=True)
    var = ((yg - mean) ** 2).mean(axis=(2, 3, 4, 5), keepdims=True)
    yn = ((yg - mean) / jnp.sqrt(var + EPS)).reshape(B, C, D, H, W)
    z = yn * m.gamma[None, :, None, None, None] + m.beta[None, :, None, None, None]
    h = z * jax.nn.sigmoid(z)
    wflip = jnp.flip(m.wct, axis=(2, 3, 4)).transpose(1, 0, 2, 3, 4)
    out = lax.conv_general_dilated(
        h, wflip, window_strides=(1, 1, 1),
        padding=((1, 2), (1, 2), (1, 2)), lhs_dilation=(2, 2, 2),
        dimension_numbers=('NCDHW', 'OIDHW', 'NCDHW'), precision=HI)
    return out + m.bct[None, :, None, None, None]


if __name__ == "__main__":
    key = jax.random.PRNGKey(0)
    kx, kt, kp = jax.random.split(key, 3)
    B, Cx, Ct, Co, D, H, W = 2, 16, 8, 16, 8, 8, 8   # N = 512 (lane-dense)
    x = jax.random.normal(kx, (B, Cx, D, H, W), jnp.float32)
    t = jax.random.normal(kt, (B, Ct, D, H, W), jnp.float32)

    mod = SpatialUpTimeBlockPallas(Cx, Ct, Co, kp)
    fwd = jax.jit(mod)
    out = jax.block_until_ready(fwd(x, t))
    assert out.shape == (B, Co, 2 * D, 2 * H, 2 * W), out.shape

    ref = jax.block_until_ready(reference(x, t, mod))
    err = float(jnp.max(jnp.abs(out - ref)))
    # bf16 matmul inputs (f32 accumulate) vs an f32/HIGHEST reference leave a
    # few e-3 of rounding noise; 5e-2 still catches any structural mistake.
    if err > 5e-2:
        raise AssertionError(f"Pallas output mismatch vs reference: max abs err {err}")
    print("KERNEL_OK")
</pallas_src>

<mosaic_0001>
module attributes {stable_mosaic.version = 11 : i64} {
  func.func @_fuse_kernel(%arg0: i32, %arg1: memref<1x16x512xf32, #tpu.memory_space<vmem>>, %arg2: memref<1x8x512xbf16, #tpu.memory_space<vmem>>, %arg3: memref<16x8xbf16, #tpu.memory_space<vmem>>, %arg4: memref<16x1xf32, #tpu.memory_space<vmem>>, %arg5: memref<16x16xf32, #tpu.memory_space<vmem>>, %arg6: memref<16x1xf32, #tpu.memory_space<vmem>>, %arg7: memref<16x1xf32, #tpu.memory_space<vmem>>, %arg8: memref<1x16x512xbf16, #tpu.memory_space<vmem>>) attributes {dimension_semantics = [#tpu.dimension_semantics<parallel>], iteration_bounds = array<i64: 2>, scalar_prefetch = 0 : i64, scratch_operands = 0 : i64, tpu.core_type = #tpu.core_type<tc>, window_params = [{transform_indices = @transform_0, window_bounds = array<i64: 1, 16, 512>}, {transform_indices = @transform_1, window_bounds = array<i64: 1, 8, 512>}, {pipeline_mode = #tpu.pipeline_mode<synchronous>, transform_indices = @transform_2, window_bounds = array<i64: 16, 8>}, {pipeline_mode = #tpu.pipeline_mode<synchronous>, transform_indices = @transform_3, window_bounds = array<i64: 16, 1>}, {pipeline_mode = #tpu.pipeline_mode<synchronous>, transform_indices = @transform_4, window_bounds = array<i64: 16, 16>}, {pipeline_mode = #tpu.pipeline_mode<synchronous>, transform_indices = @transform_5, window_bounds = array<i64: 16, 1>}, {pipeline_mode = #tpu.pipeline_mode<synchronous>, transform_indices = @transform_6, window_bounds = array<i64: 16, 1>}, {transform_indices = @transform_7, window_bounds = array<i64: 1, 16, 512>}]} {
    %c0 = arith.constant 0 : index
    %c0_0 = arith.constant 0 : index
    %c0_1 = arith.constant 0 : index
    %0 = vector.load %arg1[%c0, %c0_0, %c0_1] : memref<1x16x512xf32, #tpu.memory_space<vmem>>, vector<1x16x512xf32>
    %1 = vector.shape_cast %0 : vector<1x16x512xf32> to vector<16x512xf32>
    %c0_2 = arith.constant 0 : index
    %c0_3 = arith.constant 0 : index
    %c0_4 = arith.constant 0 : index
    %2 = vector.load %arg2[%c0_2, %c0_3, %c0_4] : memref<1x8x512xbf16, #tpu.memory_space<vmem>>, vector<1x8x512xbf16>
    %3 = vector.shape_cast %2 : vector<1x8x512xbf16> to vector<8x512xbf16>
    %c0_5 = arith.constant 0 : index
    %c0_6 = arith.constant 0 : index
    %4 = vector.load %arg3[%c0_5, %c0_6] : memref<16x8xbf16, #tpu.memory_space<vmem>>, vector<16x8xbf16>
    %cst = arith.constant dense<0.000000e+00> : vector<16x512xf32>
    %5 = tpu.matmul %4, %3, %cst {dimension_numbers = #tpu.dot_dimension_numbers<[1], [0], [0], [1], [0, 0, 1, 1], [], []>} : vector<16x8xbf16>, vector<8x512xbf16>, vector<16x512xf32> -> vector<16x512xf32>
    %6 = arith.addf %1, %5 : vector<16x512xf32>
    %c0_7 = arith.constant 0 : index
    %c0_8 = arith.constant 0 : index
    %7 = vector.load %arg4[%c0_7, %c0_8] : memref<16x1xf32, #tpu.memory_space<vmem>>, vector<16x1xf32>
    %8 = vector.broadcast %7 : vector<16x1xf32> to vector<16x512xf32>
    %9 = arith.addf %6, %8 : vector<16x512xf32>
    %cst_9 = arith.constant dense<0.000000e+00> : vector<16xf32>
    %10 = vector.multi_reduction <add>, %9, %cst_9 [1] : vector<16x512xf32> to vector<16xf32>
    %11 = vector.shape_cast %10 : vector<16xf32> to vector<16x1xf32>
    %12 = arith.mulf %9, %9 : vector<16x512xf32>
    %cst_10 = arith.constant dense<0.000000e+00> : vector<16xf32>
    %13 = vector.multi_reduction <add>, %12, %cst_10 [1] : vector<16x512xf32> to vector<16xf32>
    %14 = vector.shape_cast %13 : vector<16xf32> to vector<16x1xf32>
    %c0_11 = arith.constant 0 : index
    %c0_12 = arith.constant 0 : index
    %15 = vector.load %arg5[%c0_11, %c0_12] : memref<16x16xf32, #tpu.memory_space<vmem>>, vector<16x16xf32>
    %cst_13 = arith.constant dense<0.000000e+00> : vector<16x1xf32>
    %16 = tpu.matmul %15, %11, %cst_13 {dimension_numbers = #tpu.dot_dimension_numbers<[1], [0], [0], [1], [0, 0, 1, 1], [], []>, precision = #tpu.contract_precision<fp32>} : vector<16x16xf32>, vector<16x1xf32>, vector<16x1xf32> -> vector<16x1xf32>
    %cst_14 = arith.constant 5.120000e+02 : f32
    %17 = vector.broadcast %cst_14 : f32 to vector<16x1xf32>
    %18 = arith.divf %16, %17 : vector<16x1xf32>
    %c0_15 = arith.constant 0 : index
    %c0_16 = arith.constant 0 : index
    %19 = vector.load %arg5[%c0_15, %c0_16] : memref<16x16xf32, #tpu.memory_space<vmem>>, vector<16x16xf32>
    %cst_17 = arith.constant dense<0.000000e+00> : vector<16x1xf32>
    %20 = tpu.matmul %19, %14, %cst_17 {dimension_numbers = #tpu.dot_dimension_numbers<[1], [0], [0], [1], [0, 0, 1, 1], [], []>, precision = #tpu.contract_precision<fp32>} : vector<16x16xf32>, vector<16x1xf32>, vector<16x1xf32> -> vector<16x1xf32>
    %cst_18 = arith.constant 5.120000e+02 : f32
    %21 = vector.broadcast %cst_18 : f32 to vector<16x1xf32>
    %22 = arith.divf %20, %21 : vector<16x1xf32>
    %23 = arith.mulf %18, %18 : vector<16x1xf32>
    %24 = arith.subf %22, %23 : vector<16x1xf32>
    %cst_19 = arith.constant 0.000000e+00 : f32
    %25 = vector.broadcast %cst_19 : f32 to vector<16x1xf32>
    %26 = arith.maximumf %24, %25 : vector<16x1xf32>
    %27 = vector.broadcast %18 : vector<16x1xf32> to vector<16x512xf32>
    %28 = arith.subf %9, %27 : vector<16x512xf32>
    %cst_20 = arith.constant 9.99999974E-6 : f32
    %29 = vector.broadcast %cst_20 : f32 to vector<16x1xf32>
    %30 = arith.addf %26, %29 : vector<16x1xf32>
    %31 = math.rsqrt %30 : vector<16x1xf32>
    %32 = vector.broadcast %31 : vector<16x1xf32> to vector<16x512xf32>
    %33 = arith.mulf %28, %32 : vector<16x512xf32>
    %c0_21 = arith.constant 0 : index
    %c0_22 = arith.constant 0 : index
    %34 = vector.load %arg6[%c0_21, %c0_22] : memref<16x1xf32, #tpu.memory_space<vmem>>, vector<16x1xf32>
    %35 = vector.broadcast %34 : vector<16x1xf32> to vector<16x512xf32>
    %36 = arith.mulf %33, %35 : vector<16x512xf32>
    %c0_23 = arith.constant 0 : index
    %c0_24 = arith.constant 0 : index
    %37 = vector.load %arg7[%c0_23, %c0_24] : memref<16x1xf32, #tpu.memory_space<vmem>>, vector<16x1xf32>
    %38 = vector.broadcast %37 : vector<16x1xf32> to vector<16x512xf32>
    %39 = arith.addf %36, %38 : vector<16x512xf32>
    %40 = arith.negf %39 : vector<16x512xf32>
    %41 = math.exp %40 : vector<16x512xf32>
    %cst_25 = arith.constant 1.000000e+00 : f32
    %42 = vector.broadcast %cst_25 : f32 to vector<16x512xf32>
    %43 = arith.addf %42, %41 : vector<16x512xf32>
    %44 = arith.divf %42, %43 : vector<16x512xf32>
    %45 = arith.mulf %39, %44 : vector<16x512xf32>
    %46 = arith.truncf %45 : vector<16x512xf32> to vector<16x512xbf16>
    %c0_26 = arith.constant 0 : index
    %c0_27 = arith.constant 0 : index
    %c0_28 = arith.constant 0 : index
    %47 = vector.load %arg8[%c0_26, %c0_27, %c0_28] : memref<1x16x512xbf16, #tpu.memory_space<vmem>>, vector<1x16x512xbf16>
    %48 = vector.shape_cast %47 : vector<1x16x512xbf16> to vector<16x512xbf16>
    %49 = vector.shape_cast %46 : vector<16x512xbf16> to vector<1x16x512xbf16>
    tpu.vector_store %arg8[%c0_26, %c0_27, %c0_28], %49 {strides = array<i32>} : memref<1x16x512xbf16, #tpu.memory_space<vmem>>, vector<1x16x512xbf16>,
    return
  }
  func.func @transform_0(%arg0: i32) -> (i32, i32, i32) {
    %c0_i32 = arith.constant 0 : i32
    %c0_i32_0 = arith.constant 0 : i32
    %c0_i32_1 = arith.constant 0 : i32
    return %arg0, %c0_i32, %c0_i32_0 : i32, i32, i32
  }
  func.func @transform_1(%arg0: i32) -> (i32, i32, i32) {
    %c0_i32 = arith.constant 0 : i32
    %c0_i32_0 = arith.constant 0 : i32
    %c0_i32_1 = arith.constant 0 : i32
    return %arg0, %c0_i32, %c0_i32_0 : i32, i32, i32
  }
  func.func @transform_2(%arg0: i32) -> (i32, i32) {
    %c0_i32 = arith.constant 0 : i32
    %c0_i32_0 = arith.constant 0 : i32
    %c0_i32_1 = arith.constant 0 : i32
    return %c0_i32, %c0_i32_0 : i32, i32
  }
  func.func @transform_3(%arg0: i32) -> (i32, i32) {
    %c0_i32 = arith.constant 0 : i32
    %c0_i32_0 = arith.constant 0 : i32
    %c0_i32_1 = arith.constant 0 : i32
    return %c0_i32, %c0_i32_0 : i32, i32
  }
  func.func @transform_4(%arg0: i32) -> (i32, i32) {
    %c0_i32 = arith.constant 0 : i32
    %c0_i32_0 = arith.constant 0 : i32
    %c0_i32_1 = arith.constant 0 : i32
    return %c0_i32, %c0_i32_0 : i32, i32
  }
  func.func @transform_5(%arg0: i32) -> (i32, i32) {
    %c0_i32 = arith.constant 0 : i32
    %c0_i32_0 = arith.constant 0 : i32
    %c0_i32_1 = arith.constant 0 : i32
    return %c0_i32, %c0_i32_0 : i32, i32
  }
  func.func @transform_6(%arg0: i32) -> (i32, i32) {
    %c0_i32 = arith.constant 0 : i32
    %c0_i32_0 = arith.constant 0 : i32
    %c0_i32_1 = arith.constant 0 : i32
    return %c0_i32, %c0_i32_0 : i32, i32
  }
  func.func @transform_7(%arg0: i32) -> (i32, i32, i32) {
    %c0_i32 = arith.constant 0 : i32
    %c0_i32_0 = arith.constant 0 : i32
    %c0_i32_1 = arith.constant 0 : i32
    return %arg0, %c0_i32, %c0_i32_0 : i32, i32, i32
  }
}

module attributes {stable_mosaic.version = 11 : i64} {
  func.func @_tconv_kernel(%arg0: i32, %arg1: i32, %arg2: memref<1x128x512xbf16, #tpu.memory_space<vmem>>, %arg3: memref<128x128xbf16, #tpu.memory_space<vmem>>, %arg4: memref<128x1xf32, #tpu.memory_space<vmem>>, %arg5: memref<1x128x512xf32, #tpu.memory_space<vmem>>) attributes {dimension_semantics = [#tpu.dimension_semantics<parallel>, #tpu.dimension_semantics<parallel>], iteration_bounds = array<i64: 2, 1>, scalar_prefetch = 0 : i64, scratch_operands = 0 : i64, tpu.core_type = #tpu.core_type<tc>, window_params = [{transform_indices = @transform_0, window_bounds = array<i64: 1, 128, 512>}, {pipeline_mode = #tpu.pipeline_mode<synchronous>, transform_indices = @transform_1, window_bounds = array<i64: 128, 128>}, {pipeline_mode = #tpu.pipeline_mode<synchronous>, transform_indices = @transform_2, window_bounds = array<i64: 128, 1>}, {transform_indices = @transform_3, window_bounds = array<i64: 1, 128, 512>}]} {
    %c0 = arith.constant 0 : index
    %c0_0 = arith.constant 0 : index
    %0 = vector.load %arg3[%c0, %c0_0] : memref<128x128xbf16, #tpu.memory_space<vmem>>, vector<128x128xbf16>
    %c0_1 = arith.constant 0 : index
    %c0_2 = arith.constant 0 : index
    %c0_3 = arith.constant 0 : index
    %1 = vector.load %arg2[%c0_1, %c0_2, %c0_3] : memref<1x128x512xbf16, #tpu.memory_space<vmem>>, vector<1x128x512xbf16>
    %2 = vector.shape_cast %1 : vector<1x128x512xbf16> to vector<128x512xbf16>
    %cst = arith.constant dense<0.000000e+00> : vector<128x512xf32>
    %3 = tpu.matmul %0, %2, %cst {dimension_numbers = #tpu.dot_dimension_numbers<[1], [0], [0], [1], [0, 0, 1, 1], [], []>} : vector<128x128xbf16>, vector<128x512xbf16>, vector<128x512xf32> -> vector<128x512xf32>
    %c0_4 = arith.constant 0 : index
    %c0_5 = arith.constant 0 : index
    %4 = vector.load %arg4[%c0_4, %c0_5] : memref<128x1xf32, #tpu.memory_space<vmem>>, vector<128x1xf32>
    %5 = vector.broadcast %4 : vector<128x1xf32> to vector<128x512xf32>
    %6 = arith.addf %3, %5 : vector<128x512xf32>
    %c0_6 = arith.constant 0 : index
    %c0_7 = arith.constant 0 : index
    %c0_8 = arith.constant 0 : index
    %7 = vector.load %arg5[%c0_6, %c0_7, %c0_8] : memref<1x128x512xf32, #tpu.memory_space<vmem>>, vector<1x128x512xf32>
    %8 = vector.shape_cast %7 : vector<1x128x512xf32> to vector<128x512xf32>
    %9 = vector.shape_cast %6 : vector<128x512xf32> to vector<1x128x512xf32>
    tpu.vector_store %arg5[%c0_6, %c0_7, %c0_8], %9 {strides = array<i32>} : memref<1x128x512xf32, #tpu.memory_space<vmem>>, vector<1x128x512xf32>,
    return
  }
  func.func @transform_0(%arg0: i32, %arg1: i32) -> (i32, i32, i32) {
    %c0_i32 = arith.constant 0 : i32
    %c0_i32_0 = arith.constant 0 : i32
    return %arg0, %c0_i32, %arg1 : i32, i32, i32
  }
  func.func @transform_1(%arg0: i32, %arg1: i32) -> (i32, i32) {
    %c0_i32 = arith.constant 0 : i32
    %c0_i32_0 = arith.constant 0 : i32
    %c0_i32_1 = arith.constant 0 : i32
    return %c0_i32, %c0_i32_0 : i32, i32
  }
  func.func @transform_2(%arg0: i32, %arg1: i32) -> (i32, i32) {
    %c0_i32 = arith.constant 0 : i32
    %c0_i32_0 = arith.constant 0 : i32
    %c0_i32_1 = arith.constant 0 : i32
    return %c0_i32, %c0_i32_0 : i32, i32
  }
  func.func @transform_3(%arg0: i32, %arg1: i32) -> (i32, i32, i32) {
    %c0_i32 = arith.constant 0 : i32
    %c0_i32_0 = arith.constant 0 : i32
    return %arg0, %c0_i32, %arg1 : i32, i32, i32
  }
}

</mosaic_0001>

<bundles_post_ra>
// kernel: _unnamed_function_.2
= control target key start
LH: loop header
LB: loop body
LE: loop exit
PB: predicated region body
PF: predicated region fallthrough
CT: control target
= control target key end

     0   :  { %12 = vsyncpa [#allocation3], 0  ;;  %s2597_s0 = inlined_call_operand.vmem [shape: f32[2,16,512], index: 0, kind: input, shape index: {}]   ;;  %s2598_s1 = inlined_call_operand.vmem [shape: bf16[2,8,512], index: 1, kind: input, shape index: {}]   ;;  %s2599_s2 = inlined_call_operand.hbm [shape: bf16[16,8], index: 2, kind: input, shape index: {}]   ;;  %s2600_s3 = inlined_call_operand.hbm [shape: f32[16,1], index: 3, kind: input, shape index: {}]   ;;  %s2601_s4 = inlined_call_operand.hbm [shape: f32[16,16], index: 4, kind: input, shape index: {}]   ;;  %s2602_s5 = inlined_call_operand.hbm [shape: f32[16,1], index: 5, kind: input, shape index: {}]   ;;  %s2603_s6 = inlined_call_operand.hbm [shape: f32[16,1], index: 6, kind: input, shape index: {}]   ;;  %s2604_s7 = inlined_call_operand.vmem [shape: bf16[2,16,512], index: 7, kind: output, shape index: {}]  }
   0x1   :  { %13 = vsyncpa [#allocation5], 0 }
   0x2   :  { %14 = vsyncpa [#allocation8], 0  ;;  %s2354_s24 = smov 0  }
   0x3 LB: > { %s2304_s25 = smov [#allocation4]   ;;  %s2360_s27 = sadd.s32 4294967295, %s2302_s24   ;;  %s2302_s24 = sphi %s2354_s24, %s20_s24  }
   0x4   : > { %s233_s26 = sshll.u32 %s2304_s25, 4  ;;  %p1866_p0 = scmp.ge.s32.totalorder %s2302_s24, 1  ;;  %s234_s26 = int_to_ptr.vmem [resolvable:$true] %s233_s26 }
   0x5   : > { %p208_p1 = scmp.lt.s32.totalorder %s2302_s24, 3  ;;  %p2083_p2 = scmp.eq.s32.totalorder %s2360_s27, 0 }
   0x6   : > { %s2305_s29 = smov [#allocation7]   ;;  %s2306_s9 = smov [#allocation2]  }
   0x7   : > { %p2365_p3 = pnand %p1866_p0, %p208_p1  ;;  %s259_s30 = sshll.u32 %s2305_s29, 4  ;;  %s2371_s30 = int_to_ptr.vmem [resolvable:$true] %s259_s30 }
   0x8   : > { %s220_s10 = sshll.u32 %s2306_s9, 4  ;;  %s2165_s12 = scalar_lea.vmem %s234_s26, 256  ;;  %s2379_s10 = int_to_ptr.vmem [resolvable:$true] %s220_s10 }
   0x9   : > { %p2067_p4 = pneg %p2365_p3  ;;  %p2166_p7 = scmp.ne.s32.totalorder %s234_s26, %s2165_s12 }
   0xa   : > { %p2173_p10 = scmp.lt.s32.totalorder %s234_s26, %s234_s26  ;;  %p2174_p11 = scmp.lt.s32.totalorder %s2165_s12, %s2165_s12 }
   0xb   : > { %p2375_p5 = pnand %p2083_p2, %p2067_p4 }
   0xc   : > { %p2175_p12 = por %p2174_p11, %p2173_p10 }
   0xd   : > { %p2383_p6 = pneg %p2375_p5 }
   0xf   : > { %p2168_p8 = pnand %p2166_p7, %p2383_p6 }
  0x11   : > { %p2169_p9 = pneg %p2168_p8 }
  0x13   : > { %p2176_p13 = pnand %p2175_p12, %p2169_p9 }
  0x15   : > { %2179 = shalt.err (!%p2176_p13)
}
  0x16   : > { %s2307_s13 = smov 128   ;;  %s2308_s14 = smov 8  }
  0x17   : > { %2073 = dma.hbm_to_vmem [thread:$0]  (!%p2375_p5), %s2600_s3, 256, %s234_s26, [#allocation5], %s2307_s13, %s2307_s13, %s2308_s14  }
  0x18   : > { %s2191_s17 = scalar_lea.vmem %s2371_s30, 256  ;;  %p2199_p7 = scmp.lt.s32.totalorder %s2371_s30, %s2371_s30 }
  0x19   : > { %p2192_p0 = scmp.ne.s32.totalorder %s2371_s30, %s2191_s17  ;;  %p2200_p8 = scmp.lt.s32.totalorder %s2191_s17, %s2191_s17 }
  0x1b   : > { %p2194_p1 = pnand %p2192_p0, %p2383_p6  ;;  %p2201_p9 = por %p2200_p8, %p2199_p7 }
  0x1d   : > { %p2195_p4 = pneg %p2194_p1 }
  0x1f   : > { %p2202_p10 = pnand %p2201_p9, %p2195_p4 }
  0x21   : > { %2205 = shalt.err (!%p2202_p10)
}
  0x22   : > { %2079 = dma.hbm_to_vmem [thread:$0]  (!%p2375_p5), %s2602_s5, 256, %s2371_s30, [#allocation8], %s2307_s13, %s2307_s13, %s2308_s14  }
  0x23   : > { %s2217_s20 = scalar_lea.vmem %s2379_s10, 128  ;;  %p2225_p0 = scmp.lt.s32.totalorder %s2379_s10, %s2379_s10 }
  0x24   : > { %p2218_p11 = scmp.ne.s32.totalorder %s2379_s10, %s2217_s20  ;;  %p2226_p1 = scmp.lt.s32.totalorder %s2217_s20, %s2217_s20 }
  0x26   : > { %p2220_p12 = pnand %p2218_p11, %p2383_p6  ;;  %p2227_p4 = por %p2226_p1, %p2225_p0 }
  0x28   : > { %p2221_p13 = pneg %p2220_p12 }
  0x2a   : > { %p2228_p7 = pnand %p2227_p4, %p2221_p13 }
  0x2c   : > { %2231 = shalt.err (!%p2228_p7)
}
  0x2d   : > { %s2309_s21 = smov 64   ;;  %s2310_s22 = smov 4  }
  0x2e   : > { %2070 = dma.hbm_to_vmem [thread:$0]  (!%p2375_p5), %s2599_s2, 128, %s2379_s10, [#allocation3], %s2309_s21, %s2309_s21, %s2310_s22  }
  0x2f   : > { %s2311_s26 = smov [#allocation6]   ;;  %s2312_s30 = smov [#allocation9]  }
  0x30   : > { %s246_s29 = sshll.u32 %s2311_s26, 4  ;;  %s272_s9 = sshll.u32 %s2312_s30, 4  ;;  %s247_s29 = int_to_ptr.vmem [resolvable:$true] %s246_s29  ;;  %s273_s9 = int_to_ptr.vmem [resolvable:$true] %s272_s9 }
  0x31   : > { %s2243_s12 = scalar_lea.vmem %s247_s29, 256  ;;  %p2251_p11 = scmp.lt.s32.totalorder %s247_s29, %s247_s29 }
  0x32   : > { %p2244_p8 = scmp.ne.s32.totalorder %s247_s29, %s2243_s12  ;;  %p2252_p12 = scmp.lt.s32.totalorder %s2243_s12, %s2243_s12 }
  0x34   : > { %p2246_p9 = pnand %p2244_p8, %p2383_p6  ;;  %p2253_p13 = por %p2252_p12, %p2251_p11 }
  0x36   : > { %p2247_p10 = pneg %p2246_p9 }
  0x38   : > { %p2254_p0 = pnand %p2253_p13, %p2247_p10 }
  0x3a   : > { %2257 = shalt.err (!%p2254_p0)
}
  0x3b   : > { %2076 = dma.hbm_to_vmem [thread:$0]  (!%p2375_p5), %s2601_s4, 256, %s247_s29, [#allocation5], %s2307_s13, %s2307_s13, %s2308_s14  }
  0x3c   : > { %s2269_s16 = scalar_lea.vmem %s273_s9, 256  ;;  %p2277_p8 = scmp.lt.s32.totalorder %s273_s9, %s273_s9 }
  0x3d   : > { %p2270_p1 = scmp.ne.s32.totalorder %s273_s9, %s2269_s16  ;;  %p2278_p9 = scmp.lt.s32.totalorder %s2269_s16, %s2269_s16 }
  0x3f   : > { %p2272_p4 = pnand %p2270_p1, %p2383_p6  ;;  %p2279_p11 = por %p2278_p9, %p2277_p8 }
  0x41   : > { %p2273_p7 = pneg %p2272_p4 }
  0x43   : > { %p2280_p10 = pnand %p2279_p11, %p2273_p7 }
  0x45   : > { %2283 = shalt.err (!%p2280_p10)
}
  0x46   : > { %2082 = dma.hbm_to_vmem [thread:$0]  (!%p2375_p5), %s2603_s6, 256, %s273_s9, [#allocation8], %s2307_s13, %s2307_s13, %s2308_s14  }
  0x47   : > { %304 = sbr.rel (%p2365_p3) target bundleno = 877 (0x36d), region = 48 }
  0x4c   : > { %2289 = dma.done.wait (%p2083_p2), [#allocation3], 128  }
  0x4d   : > { %2291 = vsyncadd (%p2083_p2), [#allocation3], 4294967168 }
  0x4e   : > { %2293 = dma.done.wait (%p2083_p2), [#allocation5], 512  }
  0x4f   : > { %2295 = vsyncadd (%p2083_p2), [#allocation5], 4294966784 }
  0x50   : > { %2297 = dma.done.wait (%p2083_p2), [#allocation8], 512  }
  0x51   : > { %2299 = vsyncadd (%p2083_p2), [#allocation8], 4294966784  ;;  %p357_p3 = scmp.lt.s32.totalorder %s2360_s27, 1  ;;  %v2313_v0 = vmov 0   ;;  %vm404_vm0 = vcmask 1043456   ;;  %v512_v7 = vld [vmem:[#allocation4 + $0x8] sm:$0xff] }
  0x52   : > { %449 = vmatprep.mubr.bf16.mxu0 %v2313_v0  ;;  %492 = vmatprep.mubr.bf16.mxu1 %v2313_v0  ;;  %v2117_v10 = vld [vmem:[#allocation2] sm:$0xff]   ;;  %v511_v11 = vld [vmem:[#allocation4] sm:$0xff]  ;;  %vm400_vm1 = vcmask 64512   ;;  %vm561_vm2 = vcmask 130048  }
  0x53   : > { %s2609_s27 = smov (!%p357_p3, %s2360_s27), 1  ;;  %2111 = vset.pattern.permute.xlu0 %v2313_v0  ;;  %2112 = vset.pattern.permute.xlu1 %v2313_v0 }
  0x54   : > { %s1909_s28 = sshll.u32 %s2609_s27, 4  ;;  %520 = vperm.xlu0 %2111, %v512_v7   ;;  %s1908_s14 = sshll.u32 %s2609_s27, 6 }
  0x55   : > { %s366_s13 = scalar_lea.vmem %s2598_s1, %s1909_s28  ;;  %s2470_s21 = scalar_lea.vmem %s2597_s0, %s1908_s14 }
  0x56   : > { %v381_v1 = vld [vmem:[%s366_s13] sm:$0xff]  ;;  %v382_v2 = vld [vmem:[%s366_s13 + $0x8] sm:$0xff]  ;;  %v379_v20 = vld [vmem:[%s2470_s21 + $0x30] sm:$0xff]  ;;  %s1910_s22 = sshll.u32 %s2609_s27, 5 }
  0x57   : > { %v1887_v3 = vcombine.high %v381_v1, %v381_v1  ;;  %v1889_v4 = vcombine.high %v382_v2, %v382_v2  ;;  %v1886_v5 = vcombine.low %v381_v1, %v381_v1  ;;  %v1888_v6 = vcombine.low %v382_v2, %v382_v2  ;;  %v374_v15 = vld [vmem:[%s2470_s21 + $0x8] sm:$0xff]  ;;  %v373_v16 = vld [vmem:[%s2470_s21] sm:$0xff]  ;;  %v375_v21 = vld [vmem:[%s2470_s21 + $0x10] sm:$0xff]  ;;  %s371_s26 = scalar_lea.vmem %s2604_s7, %s1910_s22 }
  0x58   : > { %515 = vperm.xlu0 %2111, %v511_v11   ;;  %v377_v19 = vld [vmem:[%s2470_s21 + $0x20] sm:$0xff]  ;;  %v378_v26 = vld [vmem:[%s2470_s21 + $0x28] sm:$0xff]  ;;  %v380_v30 = vld [vmem:[%s2470_s21 + $0x38] sm:$0xff] }
  0x59   : > { %1890 = vmatprep.subr.msk.bf16.mxu0 %vm404_vm0, %v1887_v3  ;;  %1892 = vmatprep.subr.msk.bf16.mxu1 %vm404_vm0, %v1889_v4  ;;  %v406_v8 = vsel %vm404_vm0, %v1886_v5, 0  ;;  %v412_v9 = vsel %vm404_vm0, %v1888_v6, 0  ;;  %v376_v43 = vld [vmem:[%s2470_s21 + $0x18] sm:$0xff] }
  0x5a   : > { %432 = vmatpush1.bf16.msra.mxu0 %v406_v8  ;;  %475 = vmatpush1.bf16.msra.mxu1 %v412_v9  ;;  %v559_v2 = vld [vmem:[#allocation6] sm:$0xff]  ;;  %v1623_v9 = vld [vmem:[#allocation7] sm:$0xff] }
  0x5b   : > { %v563_v3 = vsel %vm561_vm2, %v559_v2, 0 }
  0x5c   : > { %v2520_v4 = vand.u32 4294901760, %v563_v3 }
  0x5d   : > { %1891 = vmatmul.mubr.msk.bf16.vlgmr.msra.gmra.mxu0 %vm400_vm1, %v2117_v10  ;;  %1893 = vmatmul.mubr.msk.bf16.vlgmr.msra.gmra.mxu1 %vm400_vm1, %v2117_v10  ;;  %v560_v10 = vld [vmem:[#allocation6 + $0x8] sm:$0xff] }
  0x5e   : > { %v2523_v5 = vsub.f32 %v563_v3, %v2520_v4  ;;  %1974 = vmatprep.mubr.f32.mxu1 %v2520_v4  ;;  %v566_v11 = vsel %vm561_vm2, %v560_v10, 0 }
  0x60   : > { %v2527_v6 = vand.u32 4294901760, %v2523_v5 }
  0x62   : > { %v638_v7 = vsub.f32 %v2523_v5, %v2527_v6 }
  0x64   : > { %v2531_v8 = vand.u32 4294901760, %v638_v7 }
  0x66   : > { %1967 = vmatprep.mubr.f32.mxu0 %v2531_v8 }
  0xcf   : > { %v521_v12 = vpop.permute.xlu0 %520 }
  0xd3   : > { %v516_v27 = vpop.permute.xlu0 %515 }
 0x11d   : > { %v451_v13 = vpop.f32.mrf.mxu0  ;;  %v494_v14 = vpop.f32.mrf.mxu1 }
 0x11e   : > { %v503_v23 = vadd.f32 %v451_v13, %v373_v16  ;;  %v505_v31 = vadd.f32 %v494_v14, %v375_v21 }
 0x11f   : > { %v453_v17 = vpop.f32.mrf.mxu0  ;;  %v496_v18 = vpop.f32.mrf.mxu1 }
 0x120   : > { %v504_v22 = vadd.f32 %v453_v17, %v374_v15  ;;  %v2483_v37 = vadd.f32 %v516_v27, %v503_v23  ;;  %v2489_v41 = vadd.f32 %v516_v27, %v505_v31  ;;  %v506_v50 = vadd.f32 %v496_v18, %v376_v43 }
 0x121   : > { %v455_v24 = vpop.f32.mrf.mxu0  ;;  %v498_v25 = vpop.f32.mrf.mxu1 }
 0x122   : > { %v507_v28 = vadd.f32 %v455_v24, %v377_v19  ;;  %v509_v29 = vadd.f32 %v498_v25, %v379_v20  ;;  %v2479_v32 = vadd.f32 %v516_v27, %v504_v22  ;;  %v541_v49 = vmul.f32 %v2483_v37, %v2483_v37 }
 0x123   : > { %v457_v33 = vpop.f32.mrf.mxu0  ;;  %v500_v34 = vpop.f32.mrf.mxu1  ;;  %v543_v54 = vmul.f32 %v2489_v41, %v2489_v41  ;;  %v2515_v60 = vadd.f32 %v516_v27, %v506_v50 }
 0x124   : > { %v2481_v35 = vadd.f32 %v521_v12, %v507_v28  ;;  %v508_v36 = vadd.f32 %v457_v33, %v378_v26  ;;  %v510_v38 = vadd.f32 %v500_v34, %v380_v30  ;;  %v2485_v39 = vadd.f32 %v521_v12, %v509_v29 }
 0x125   : > { %v542_v42 = vmul.f32 %v2479_v32, %v2479_v32  ;;  %v531_v44 = vadd.f32 %v2479_v32, %v2483_v37  ;;  %v544_v0 = vmul.f32 %v2515_v60, %v2515_v60 }
 0x126   : > { %v2487_v40 = vadd.f32 %v521_v12, %v508_v36  ;;  %v545_v45 = vmul.f32 %v2481_v35, %v2481_v35  ;;  %v2500_v47 = vadd.f32 %v521_v12, %v510_v38  ;;  %v547_v52 = vmul.f32 %v2485_v39, %v2485_v39 }
 0x127   : > { %v549_v55 = vadd.f32 %v542_v42, %v541_v49  ;;  %v532_v59 = vadd.f32 %v531_v44, %v2489_v41  ;;  %v2534_v12 = vand.u32 4294901760, %v566_v11  ;;  %v1643_v49 = vld [vmem:[#allocation9] sm:$0xff] }
 0x128   : > { %v546_v46 = vmul.f32 %v2487_v40, %v2487_v40  ;;  %v536_v48 = vadd.f32 %v2487_v40, %v2481_v35  ;;  %v548_v57 = vmul.f32 %v2500_v47, %v2500_v47 }
 0x129   : > { %v533_v62 = vadd.f32 %v532_v59, %v2515_v60  ;;  %v550_v63 = vadd.f32 %v549_v55, %v543_v54  ;;  %v2537_v13 = vsub.f32 %v566_v11, %v2534_v12 }
 0x12a   : > { %v537_v51 = vadd.f32 %v536_v48, %v2485_v39  ;;  %v554_v53 = vadd.f32 %v546_v46, %v545_v45  ;;  %v1624_v48 = vld [vmem:[#allocation7 + $0x8] sm:$0xff] }
 0x12b   : > { %v551_v1 = vadd.f32 %v550_v63, %v544_v0  ;;  %v2540_v14 = vand.u32 4294901760, %v2537_v13 }
 0x12c   : > { %v538_v56 = vadd.f32 %v537_v51, %v2500_v47  ;;  %v555_v58 = vadd.f32 %v554_v53, %v547_v52 }
 0x12d   : > { %v648_v17 = vsub.f32 %v2537_v13, %v2540_v14 }
 0x12e   : > { %539 = vadd.xlane.f32.xlu1 %v538_v56  ;;  %v556_v61 = vadd.f32 %v555_v58, %v548_v57 }
 0x12f   : > { %v649_v21 = vand.u32 4294901760, %v648_v17 }
 0x130   : > { %557 = vadd.xlane.f32.xlu0 %v556_v61 }
 0x132   : > { %534 = vadd.xlane.f32.xlu1 %v533_v62 }
 0x136   : > { %552 = vadd.xlane.f32.xlu1 %v551_v1 }
 0x146   : > { %1627 = vperm.xlu0 %2111, %v1623_v9  }
 0x147   : > { %1632 = vperm.xlu1 %2112, %v1624_v48  }
 0x14b   : > { %1647 = vperm.xlu1 %2112, %v1643_v49  }
 0x1b7   : > { %v540_v15 = vpop.xlane.xlu1 %539 }
 0x1b8   : > { %v597_v16 = vand.u32 4294901760, %v540_v15 }
 0x1b9   : > { %v558_v25 = vpop.xlane.xlu0 %557 }
 0x1ba   : > { %v685_v18 = vsub.f32 %v540_v15, %v597_v16  ;;  %1963 = vmatprep.subr.mxu0 %v597_v16  ;;  %v2545_v29 = vand.u32 4294901760, %v558_v25 }
 0x1bb   : > { %1964 = vmatpush3.msra.mxu0 %v597_v16  ;;  %v535_v19 = vpop.xlane.xlu1 %534 }
 0x1bc   : > { %v600_v20 = vand.u32 4294901760, %v535_v19  ;;  %v686_v22 = vand.u32 4294901760, %v685_v18  ;;  %v1190_v34 = vsub.f32 %v558_v25, %v2545_v29 }
 0x1be   : > { %v692_v23 = vsub.f32 %v535_v19, %v600_v20  ;;  %1965 = vmatprep.subr.mxu0 %v600_v20  ;;  %v687_v24 = vsub.f32 %v685_v18, %v686_v22  ;;  %v1191_v38 = vand.u32 4294901760, %v1190_v34 }
 0x1bf   : > { %1966 = vmatpush3.msra.mxu0 %v600_v20  ;;  %v553_v28 = vpop.xlane.xlu1 %552 }
 0x1c0   : > { %1977 = vmatprep.subr.mxu0 %v685_v18  ;;  %1968 = vmatmul.mubr.f32.vlgmr.msra.gmra.mxu0 %v649_v21  ;;  %v688_v26 = vand.u32 4294901760, %v687_v24  ;;  %v693_v27 = vand.u32 4294901760, %v692_v23  ;;  %v2547_v31 = vand.u32 4294901760, %v553_v28  ;;  %v1192_v43 = vsub.f32 %v1190_v34, %v1191_v38 }
 0x1c1   : > { %1978 = vmatpush3.msra.mxu0 %v685_v18  ;;  %1981 = vmatprep.mubr.f32.mxu0 %v2523_v5 }
 0x1c2   : > { %1970 = vmatprep.subr.mxu1 %v688_v26  ;;  %1979 = vmatprep.subr.mxu0 %v692_v23  ;;  %v694_v30 = vsub.f32 %v692_v23, %v693_v27  ;;  %v1197_v36 = vsub.f32 %v553_v28, %v2547_v31  ;;  %v1193_v45 = vand.u32 4294901760, %v1192_v43 }
 0x1c3   : > { %1971 = vmatpush3.msra.mxu1 %v688_v26  ;;  %1980 = vmatpush3.msra.mxu0 %v692_v23 }
 0x1c4   : > { %1991 = vmatprep.subr.mxu0 %v686_v22  ;;  %1982 = vmatmul.mubr.f32.vlgmr.msra.gmra.mxu0 %v2537_v13  ;;  %v695_v33 = vand.u32 4294901760, %v694_v30  ;;  %v1198_v42 = vand.u32 4294901760, %v1197_v36 }
 0x1c5   : > { %1992 = vmatpush3.msra.mxu0 %v686_v22  ;;  %1995 = vmatprep.mubr.f32.mxu0 %v2520_v4 }
 0x1c6   : > { %1972 = vmatprep.subr.mxu1 %v695_v33  ;;  %1993 = vmatprep.subr.mxu0 %v693_v27  ;;  %v1199_v44 = vsub.f32 %v1197_v36, %v1198_v42 }
 0x1c7   : > { %1973 = vmatpush3.msra.mxu1 %v695_v33  ;;  %1994 = vmatpush3.msra.mxu0 %v693_v27 }
 0x1c8   : > { %1975 = vmatmul.mubr.f32.vlgmr.msra.gmra.mxu1 %v2534_v12  ;;  %1984 = vmatprep.subr.mxu1 %v597_v16  ;;  %v1200_v46 = vand.u32 4294901760, %v1199_v44 }
 0x1c9   : > { %2005 = vmatprep.subr.mxu0 %v2545_v29  ;;  %1985 = vmatpush3.msra.mxu1 %v597_v16 }
 0x1ca   : > { %1996 = vmatmul.mubr.f32.vlgmr.msra.gmra.mxu0 %v2534_v12  ;;  %1986 = vmatprep.subr.mxu1 %v600_v20 }
 0x1cb   : > { %2006 = vmatpush3.msra.mxu0 %v2545_v29  ;;  %1987 = vmatpush3.msra.mxu1 %v600_v20 }
 0x1cc   : > { %2007 = vmatprep.subr.mxu0 %v2547_v31  ;;  %1988 = vmatprep.mubr.f32.mxu1 %v2527_v6 }
 0x1cd   : > { %2008 = vmatpush3.msra.mxu0 %v2547_v31  ;;  %1989 = vmatmul.mubr.f32.vlgmr.msra.gmra.mxu1 %v2540_v14 }
 0x1ce   : > { %1998 = vmatprep.subr.mxu1 %v597_v16  ;;  %2009 = vmatprep.mubr.f32.mxu0 %v2531_v8 }
 0x1cf   : > { %2019 = vmatprep.subr.mxu0 %v1190_v34  ;;  %1999 = vmatpush3.msra.mxu1 %v597_v16 }
 0x1d0   : > { %2010 = vmatmul.mubr.f32.vlgmr.msra.gmra.mxu0 %v649_v21  ;;  %2000 = vmatprep.subr.mxu1 %v600_v20 }
 0x1d1   : > { %2020 = vmatpush3.msra.mxu0 %v1190_v34  ;;  %2001 = vmatpush3.msra.mxu1 %v600_v20 }
 0x1d2   : > { %2021 = vmatprep.subr.mxu0 %v1197_v36  ;;  %2002 = vmatprep.mubr.f32.mxu1 %v2520_v4 }
 0x1d3   : > { %2022 = vmatpush3.msra.mxu0 %v1197_v36  ;;  %2003 = vmatmul.mubr.f32.vlgmr.msra.gmra.mxu1 %v2534_v12 }
 0x1d4   : > { %2012 = vmatprep.subr.mxu1 %v1193_v45  ;;  %2023 = vmatprep.mubr.f32.mxu0 %v2523_v5 }
 0x1d5   : > { %2033 = vmatprep.subr.mxu0 %v1191_v38  ;;  %2013 = vmatpush3.msra.mxu1 %v1193_v45 }
 0x1d6   : > { %2024 = vmatmul.mubr.f32.vlgmr.msra.gmra.mxu0 %v2537_v13  ;;  %2014 = vmatprep.subr.mxu1 %v1200_v46 }
 0x1d7   : > { %2034 = vmatpush3.msra.mxu0 %v1191_v38  ;;  %2015 = vmatpush3.msra.mxu1 %v1200_v46 }
 0x1d8   : > { %2035 = vmatprep.subr.mxu0 %v1198_v42  ;;  %2016 = vmatprep.mubr.f32.mxu1 %v2520_v4 }
 0x1d9   : > { %2036 = vmatpush3.msra.mxu0 %v1198_v42  ;;  %2017 = vmatmul.mubr.f32.vlgmr.msra.gmra.mxu1 %v2534_v12 }
 0x1da   : > { %2026 = vmatprep.subr.mxu1 %v2545_v29  ;;  %2030 = vmatprep.mubr.f32.mxu1 %v2527_v6 }
 0x1db   : > { %2027 = vmatpush3.msra.mxu1 %v2545_v29  ;;  %2037 = vmatprep.mubr.f32.mxu0 %v2520_v4 }
 0x1dc   : > { %2028 = vmatprep.subr.mxu1 %v2547_v31  ;;  %2038 = vmatmul.mubr.f32.vlgmr.msra.gmra.mxu0 %v2534_v12 }
 0x1dd   : > { %2029 = vmatpush3.msra.mxu1 %v2547_v31 }
 0x1de   : > { %2031 = vmatmul.mubr.f32.vlgmr.msra.gmra.mxu1 %v2540_v14  ;;  %2040 = vmatprep.subr.mxu1 %v2545_v29 }
 0x1df   : > { %2041 = vmatpush3.msra.mxu1 %v2545_v29  ;;  %2044 = vmatprep.mubr.f32.mxu1 %v2520_v4 }
 0x1e0   : > { %2042 = vmatprep.subr.mxu1 %v2547_v31 }
 0x1e1   : > { %2043 = vmatpush3.msra.mxu1 %v2547_v31 }
 0x1e2   : > { %2045 = vmatmul.mubr.f32.vlgmr.msra.gmra.mxu1 %v2534_v12 }
 0x280   : > { %v1969_v50 = vpop.f32.mrf.mxu0 }
 0x282   : > { %v641_v51 = vpop.f32.mrf.mxu0 }
 0x284   : > { %v1983_v52 = vpop.f32.mrf.mxu0 }
 0x286   : > { %v814_v53 = vpop.f32.mrf.mxu0 }
 0x288   : > { %v1976_v54 = vpop.f32.mrf.mxu1 }
 0x289   : > { %v739_v55 = vadd.f32 %v1976_v54, %v1969_v50 }
 0x28a   : > { %v732_v56 = vpop.f32.mrf.mxu1  ;;  %v1997_v57 = vpop.f32.mrf.mxu0 }
 0x28b   : > { %v733_v58 = vadd.f32 %v732_v56, %v641_v51  ;;  %v822_v59 = vadd.f32 %v1983_v52, %v739_v55  ;;  %v1644_v52 = vld [vmem:[#allocation9 + $0x8] sm:$0xff] }
 0x28c   : > { %v981_v61 = vpop.f32.mrf.mxu0 }
 0x28d   : > { %v815_v62 = vadd.f32 %v814_v53, %v733_v58  ;;  %v1990_v63 = vpop.f32.mrf.mxu1  ;;  %v1633_v53 = vpop.permute.xlu1 %1632 }
 0x28e   : > { %v905_v0 = vadd.f32 %v1990_v63, %v822_v59 }
 0x28f   : > { %v896_v1 = vpop.f32.mrf.mxu1 }
 0x290   : > { %v897_v2 = vadd.f32 %v896_v1, %v815_v62  ;;  %v988_v3 = vadd.f32 %v1997_v57, %v905_v0  ;;  %v2011_v4 = vpop.f32.mrf.mxu0 }
 0x291   : > { %v1648_v54 = vpop.permute.xlu1 %1647 }
 0x292   : > { %v982_v5 = vadd.f32 %v981_v61, %v897_v2  ;;  %v1146_v6 = vpop.f32.mrf.mxu0 }
 0x293   : > { %v2004_v7 = vpop.f32.mrf.mxu1 }
 0x294   : > { %v1067_v8 = vadd.f32 %v2004_v7, %v988_v3 }
 0x295   : > { %v1060_v9 = vpop.f32.mrf.mxu1 }
 0x296   : > { %v1072_v10 = vmul.f32 0.001953125, %v1067_v8  ;;  %v1061_v11 = vadd.f32 %v1060_v9, %v982_v5  ;;  %v2025_v12 = vpop.f32.mrf.mxu0  ;;  %v1628_v9 = vpop.permute.xlu0 %1627 }
 0x298   : > { %1590 = vperm.xlu1 %2112, %v1072_v10   ;;  %v1071_v14 = vmul.f32 0.001953125, %v1061_v11  ;;  %v1319_v16 = vpop.f32.mrf.mxu0  ;;  %v1578_v33 = vmul.f32 %v1072_v10, %v1072_v10 }
 0x299   : > { %v2018_v13 = vpop.f32.mrf.mxu1 }
 0x29a   : > { %v1244_v15 = vadd.f32 %v2018_v13, %v2011_v4  ;;  %v1577_v38 = vmul.f32 %v1071_v14, %v1071_v14 }
 0x29b   : > { %v1237_v17 = vpop.f32.mrf.mxu1 }
 0x29c   : > { %v1238_v18 = vadd.f32 %v1237_v17, %v1146_v6  ;;  %v1327_v19 = vadd.f32 %v2025_v12, %v1244_v15  ;;  %1585 = vperm.xlu1 %2112, %v1071_v14   ;;  %v2039_v22 = vpop.f32.mrf.mxu0 }
 0x29e   : > { %v1320_v20 = vadd.f32 %v1319_v16, %v1238_v18  ;;  %v2032_v21 = vpop.f32.mrf.mxu1  ;;  %v1486_v27 = vpop.f32.mrf.mxu0 }
 0x29f   : > { %v1410_v23 = vadd.f32 %v2032_v21, %v1327_v19 }
 0x2a0   : > { %v1401_v24 = vpop.f32.mrf.mxu1 }
 0x2a1   : > { %v1402_v25 = vadd.f32 %v1401_v24, %v1320_v20  ;;  %v1493_v26 = vadd.f32 %v2039_v22, %v1410_v23 }
 0x2a2   : > { %v2046_v28 = vpop.f32.mrf.mxu1 }
 0x2a3   : > { %v1487_v29 = vadd.f32 %v1486_v27, %v1402_v25  ;;  %v1572_v30 = vadd.f32 %v2046_v28, %v1493_v26 }
 0x2a4   : > { %v1565_v31 = vpop.f32.mrf.mxu1 }
 0x2a5   : > { %v1576_v34 = vmul.f32 0.001953125, %v1572_v30  ;;  %v1566_v36 = vadd.f32 %v1565_v31, %v1487_v29 }
 0x2a7   : > { %v1580_v42 = vsub.f32 %v1576_v34, %v1578_v33  ;;  %v1575_v43 = vmul.f32 0.001953125, %v1566_v36 }
 0x2a9   : > { %v1582_v44 = vmax.f32 %v1580_v42, 0.0  ;;  %v1579_v45 = vsub.f32 %v1575_v43, %v1577_v38 }
 0x2ab   : > { %v1602_v46 = vadd.f32 1e-05, %v1582_v44  ;;  %v1581_v48 = vmax.f32 %v1579_v45, 0.0 }
 0x2ad   : > { %2118 = vrsqrt.f32 %v1602_v46  ;;  %v1601_v49 = vadd.f32 1e-05, %v1581_v48 }
 0x2af   : > { %2120 = vrsqrt.f32 %v1601_v49 }
 0x2ba   : > { %v2119_v50 = vpop.eup %2118 }
 0x2bb   : > { %1612 = vperm.xlu1 %2112, %v2119_v50  }
 0x2bc   : > { %v2121_v51 = vpop.eup %2120 }
 0x2bf   : > { %1607 = vperm.xlu1 %2112, %v2121_v51  }
 0x2c3   : > { %1652 = vperm.xlu1 %2112, %v1644_v52  }
 0x313   : > { %v1591_v55 = vpop.permute.xlu1 %1590 }
 0x314   : > { %v1597_v58 = vsub.f32 %v2481_v35, %v1591_v55  ;;  %v1598_v59 = vsub.f32 %v2487_v40, %v1591_v55  ;;  %v1599_v61 = vsub.f32 %v2485_v39, %v1591_v55  ;;  %v1600_v2 = vsub.f32 %v2500_v47, %v1591_v55 }
 0x317   : > { %v1586_v56 = vpop.permute.xlu1 %1585 }
 0x318   : > { %v1593_v62 = vsub.f32 %v2483_v37, %v1586_v56  ;;  %v1594_v63 = vsub.f32 %v2479_v32, %v1586_v56  ;;  %v1595_v0 = vsub.f32 %v2489_v41, %v1586_v56  ;;  %v1596_v1 = vsub.f32 %v2515_v60, %v1586_v56 }
 0x336   : > { %v1613_v57 = vpop.permute.xlu1 %1612 }
 0x337   : > { %v1619_v3 = vmul.f32 %v1613_v57, %v1597_v58  ;;  %v1620_v4 = vmul.f32 %v1613_v57, %v1598_v59  ;;  %v1621_v5 = vmul.f32 %v1613_v57, %v1599_v61  ;;  %v1622_v39 = vmul.f32 %v1613_v57, %v1600_v2 }
 0x339   : > { %v1639_v12 = vmul.f32 %v1633_v53, %v1619_v3  ;;  %v1640_v41 = vmul.f32 %v1633_v53, %v1620_v4  ;;  %v1641_v13 = vmul.f32 %v1633_v53, %v1621_v5  ;;  %v1642_v17 = vmul.f32 %v1633_v53, %v1622_v39 }
 0x33a   : > { %v1608_v6 = vpop.permute.xlu1 %1607 }
 0x33b   : > { %v1615_v7 = vmul.f32 %v1608_v6, %v1593_v62  ;;  %v1616_v35 = vmul.f32 %v1608_v6, %v1594_v63  ;;  %v1617_v8 = vmul.f32 %v1608_v6, %v1595_v0  ;;  %v1618_v40 = vmul.f32 %v1608_v6, %v1596_v1 }
 0x33d   : > { %v1635_v10 = vmul.f32 %v1628_v9, %v1615_v7  ;;  %v1636_v37 = vmul.f32 %v1628_v9, %v1616_v35  ;;  %v1637_v11 = vmul.f32 %v1628_v9, %v1617_v8  ;;  %v1638_v32 = vmul.f32 %v1628_v9, %v1618_v40 }
 0x33e   : > { %v1653_v60 = vpop.permute.xlu1 %1652 }
 0x33f   : > { %v1655_v14 = vadd.f32 %v1648_v54, %v1635_v10  ;;  %v1656_v47 = vadd.f32 %v1648_v54, %v1636_v37  ;;  %v1657_v15 = vadd.f32 %v1648_v54, %v1637_v11  ;;  %v1658_v16 = vadd.f32 %v1648_v54, %v1638_v32 }
 0x340   : > { %v1659_v18 = vadd.f32 %v1653_v60, %v1639_v12  ;;  %v1660_v19 = vadd.f32 %v1653_v60, %v1640_v41  ;;  %v1661_v23 = vadd.f32 %v1653_v60, %v1641_v13  ;;  %v1662_v25 = vadd.f32 %v1653_v60, %v1642_v17 }
 0x341   : > { %v1894_v20 = vmul.f32 -1.442695, %v1655_v14  ;;  %v1895_v21 = vmul.f32 -1.442695, %v1656_v47  ;;  %v1896_v22 = vmul.f32 -1.442695, %v1657_v15 }
 0x342   : > { %v1897_v24 = vmul.f32 -1.442695, %v1658_v16  ;;  %v1898_v26 = vmul.f32 -1.442695, %v1659_v18  ;;  %v1899_v27 = vmul.f32 -1.442695, %v1660_v19 }
 0x343   : > { %2122 = vpow2.f32 %v1894_v20  ;;  %v1900_v28 = vmul.f32 -1.442695, %v1661_v23  ;;  %v1901_v29 = vmul.f32 -1.442695, %v1662_v25 }
 0x344   : > { %2124 = vpow2.f32 %v1895_v21 }
 0x345   : > { %2126 = vpow2.f32 %v1896_v22 }
 0x346   : > { %2128 = vpow2.f32 %v1897_v24 }
 0x347   : > { %2130 = vpow2.f32 %v1898_v26 }
 0x348   : > { %2132 = vpow2.f32 %v1899_v27 }
 0x349   : > { %2134 = vpow2.f32 %v1900_v28 }
 0x34a   : > { %2136 = vpow2.f32 %v1901_v29 }
 0x350   : > { %v2123_v30 = vpop.eup %2122 }
 0x351   : > { %v2125_v31 = vpop.eup %2124  ;;  %v1687_v33 = vadd.f32 1.0, %v2123_v30 }
 0x352   : > { %v2127_v34 = vpop.eup %2126  ;;  %v1688_v36 = vadd.f32 1.0, %v2125_v31 }
 0x353   : > { %v2129_v38 = vpop.eup %2128  ;;  %v1689_v42 = vadd.f32 1.0, %v2127_v34  ;;  %2138 = vrcp.f32 %v1687_v33 }
 0x354   : > { %v2131_v43 = vpop.eup %2130  ;;  %v1690_v44 = vadd.f32 1.0, %v2129_v38  ;;  %2140 = vrcp.f32 %v1688_v36 }
 0x355   : > { %v2133_v45 = vpop.eup %2132  ;;  %2142 = vrcp.f32 %v1689_v42  ;;  %v1691_v46 = vadd.f32 1.0, %v2131_v43 }
 0x356   : > { %v2135_v48 = vpop.eup %2134  ;;  %2144 = vrcp.f32 %v1690_v44  ;;  %v1692_v49 = vadd.f32 1.0, %v2133_v45 }
 0x357   : > { %v2137_v50 = vpop.eup %2136  ;;  %v1693_v51 = vadd.f32 1.0, %v2135_v48  ;;  %2146 = vrcp.f32 %v1691_v46 }
 0x358   : > { %v1694_v52 = vadd.f32 1.0, %v2137_v50  ;;  %2148 = vrcp.f32 %v1692_v49 }
 0x359   : > { %2150 = vrcp.f32 %v1693_v51 }
 0x35a   : > { %2152 = vrcp.f32 %v1694_v52 }
 0x360   : > { %v2139_v53 = vpop.eup %2138 }
 0x361   : > { %v2141_v54 = vpop.eup %2140  ;;  %v1711_v55 = vmul.f32 %v2139_v53, %v1655_v14 }
 0x362   : > { %v2143_v56 = vpop.eup %2142  ;;  %v1712_v57 = vmul.f32 %v2141_v54, %v1656_v47 }
 0x363   : > { %v2145_v58 = vpop.eup %2144  ;;  %v1713_v59 = vmul.f32 %v2143_v56, %v1657_v15 }
 0x364   : > { %v2147_v61 = vpop.eup %2146  ;;  %v1714_v62 = vmul.f32 %v2145_v58, %v1658_v16  ;;  %v1911_v63 = vpack.c.bf16 %v1712_v57, %v1711_v55 }
 0x365   : > { %v2149_v0 = vpop.eup %2148  ;;  %v1715_v1 = vmul.f32 %v2147_v61, %v1659_v18 }
 0x366   : > { %v2151_v2 = vpop.eup %2150  ;;  %v1912_v3 = vpack.c.bf16 %v1714_v62, %v1713_v59  ;;  %1743 = vst [vmem:[%s371_s26] sm:$0xff] %v1911_v63  ;;  %v1716_v4 = vmul.f32 %v2149_v0, %v1660_v19 }
 0x367   : > { %v2153_v5 = vpop.eup %2152  ;;  %v1717_v6 = vmul.f32 %v2151_v2, %v1661_v23 }
 0x368   : > { %1744 = vst [vmem:[%s371_s26 + $0x8] sm:$0xff] %v1912_v3  ;;  %v1718_v7 = vmul.f32 %v2153_v5, %v1662_v25  ;;  %v1913_v35 = vpack.c.bf16 %v1716_v4, %v1715_v1 }
 0x36a   : > { %v1914_v8 = vpack.c.bf16 %v1718_v7, %v1717_v6  ;;  %1745 = vst [vmem:[%s371_s26 + $0x10] sm:$0xff] %v1913_v35 }
 0x36c   : > { %1746 = vst [vmem:[%s371_s26 + $0x18] sm:$0xff] %v1914_v8 }
 0x36d PF: > { %s20_s24 = sadd.s32 1, %s2302_s24  }
 0x36e   : > { %p17_p2 = scmp.ge.s32.totalorder %s20_s24, 4  }
 0x370   :  { %19 = sbr.rel (!%p17_p2) target bundleno = 3 (0x3), region = 102 }
 0x375   :  { %1768 = vsyncpa [#allocation3], 1 }
 0x376   :  { %1770 = vsyncpa [#allocation3 + $0x1], 1 }
 0x377   :  { %1771 = vsyncpa [#allocation5], 1 }
 0x378   :  { %1772 = vsyncpa [#allocation8], 1 }

// kernel: _unnamed_function_.3
= control target key start
LH: loop header
LB: loop body
LE: loop exit
PB: predicated region body
PF: predicated region fallthrough
CT: control target
= control target key end

     0   :  { %s1121_s12 = smov 0   ;;  %s1123_s13 = smov 0   ;;  %s1348_s0 = inlined_call_operand.vmem [shape: bf16[2,128,512], index: 0, kind: input, shape index: {}]   ;;  %s1349_s1 = inlined_call_operand.vmem [shape: bf16[128,128], index: 1, kind: input, shape index: {}]   ;;  %s1350_s2 = inlined_call_operand.vmem [shape: f32[128,1], index: 2, kind: input, shape index: {}]   ;;  %s1351_s3 = inlined_call_operand.vmem [shape: f32[2,128,512], index: 3, kind: output, shape index: {}]  }
   0x1   :  { %s1125_s14 = smov 0  }
   0x2 LB: > { %s25_s15 = sadd.s32 1, %s1094_s13  ;;  %p944_p0 = scmp.ge.s32.totalorder %s1098_s14, 1  ;;  %s1098_s14 = sphi %s1125_s14, %s13_s14   ;;  %s1094_s13 = sphi %s1123_s13, %s1353_s13   ;;  %s1090_s12 = sphi %s1121_s12, %s1352_s12  }
   0x3   : > { %p27_p1 = scmp.ge.s32.totalorder %s25_s15, 2  ;;  %p158_p2 = scmp.lt.s32.totalorder %s1098_s14, 3 }
   0x5   : > { %s1355_s15 = smov (%p27_p1, %s25_s15), 0  ;;  %p159_p3 = pnand %p944_p0, %p158_p2 }
   0x6   : > { %p191_p4 = scmp.lt.s32.totalorder (!%p159_p3), %s1090_s12, 1 }
   0x7   : > { %162 = sbr.rel (%p159_p3) target bundleno = 306 (0x132), region = 32 }
   0xc   : > { %v1100_v0 = vmov 0   ;;  %s1357_s12 = smov (!%p191_p4, %s1090_s12), 1  ;;  %v259_v27 = vld [vmem:[%s1350_s2] sm:$0xff]  ;;  %v261_v30 = vld [vmem:[%s1350_s2 + $0x10] sm:$0xff]  ;;  %v260_v33 = vld [vmem:[%s1350_s2 + $0x8] sm:$0xff] }
   0xd   : > { %595 = vmatprep.mubr.bf16.mxu0 %v1100_v0  ;;  %708 = vmatprep.mubr.bf16.mxu1 %v1100_v0  ;;  %s991_s16 = sshll.u32 %s1357_s12, 8  ;;  %v262_v34 = vld [vmem:[%s1350_s2 + $0x18] sm:$0xff]  ;;  %v1068_v37 = vld [vmem:[%s1349_s1] sm:$0xff]   ;;  %v264_v38 = vld [vmem:[%s1350_s2 + $0x28] sm:$0xff]  ;;  %s992_s22 = sshll.u32 %s1357_s12, 9 }
   0xe   : > { %1018 = vset.pattern.permute.xlu0 %v1100_v0  ;;  %1019 = vset.pattern.permute.xlu1 %v1100_v0  ;;  %s1149_s19 = scalar_lea.vmem %s1348_s0, %s991_s16  ;;  %v263_v39 = vld [vmem:[%s1350_s2 + $0x20] sm:$0xff]  ;;  %v266_v40 = vld [vmem:[%s1350_s2 + $0x38] sm:$0xff]  ;;  %v265_v41 = vld [vmem:[%s1350_s2 + $0x30] sm:$0xff]  ;;  %s1273_s25 = scalar_lea.vmem %s1351_s3, %s992_s22 }
   0xf   : > { %v1020_v1 = vld [vmem:[%s1149_s19 + $0xe4] ss:$16 sps:$4 sm:$0xff]   ;;  %v1022_v2 = vld [vmem:[%s1149_s19 + $0xec] ss:$16 sps:$4 sm:$0xff]   ;;  %v1024_v3 = vld [vmem:[%s1149_s19 + $0xe0] ss:$16 sps:$4 sm:$0xff]   ;;  %277 = vperm.xlu0 %1018, %v259_v27   ;;  %287 = vperm.xlu1 %1019, %v261_v30  }
  0x10   : > { %563 = vmatprep.subr.bf16.mxu0 %v1020_v1  ;;  %v1025_v4 = vld [vmem:[%s1149_s19 + $0xe8] ss:$16 sps:$4 sm:$0xff]   ;;  %676 = vmatprep.subr.bf16.mxu1 %v1022_v2  ;;  %v1026_v5 = vld [vmem:[%s1149_s19 + $0xc4] ss:$16 sps:$4 sm:$0xff]   ;;  %v1028_v6 = vld [vmem:[%s1149_s19 + $0xcc] ss:$16 sps:$4 sm:$0xff]  }
  0x11   : > { %564 = vmatpush1.bf16.msra.mxu0 %v1024_v3  ;;  %677 = vmatpush1.bf16.msra.mxu1 %v1025_v4  ;;  %v1030_v7 = vld [vmem:[%s1149_s19 + $0xc0] ss:$16 sps:$4 sm:$0xff]   ;;  %v1031_v8 = vld [vmem:[%s1149_s19 + $0xc8] ss:$16 sps:$4 sm:$0xff]   ;;  %v1032_v9 = vld [vmem:[%s1149_s19 + $0xa4] ss:$16 sps:$4 sm:$0xff]  }
  0x12   : > { %565 = vmatprep.subr.bf16.mxu0 %v1026_v5  ;;  %678 = vmatprep.subr.bf16.mxu1 %v1028_v6  ;;  %v1034_v10 = vld [vmem:[%s1149_s19 + $0xac] ss:$16 sps:$4 sm:$0xff]   ;;  %v1036_v11 = vld [vmem:[%s1149_s19 + $0xa0] ss:$16 sps:$4 sm:$0xff]   ;;  %v1037_v12 = vld [vmem:[%s1149_s19 + $0xa8] ss:$16 sps:$4 sm:$0xff]  }
  0x13   : > { %v1038_v13 = vld [vmem:[%s1149_s19 + $0x84] ss:$16 sps:$4 sm:$0xff]   ;;  %v1040_v14 = vld [vmem:[%s1149_s19 + $0x8c] ss:$16 sps:$4 sm:$0xff]   ;;  %v1042_v15 = vld [vmem:[%s1149_s19 + $0x80] ss:$16 sps:$4 sm:$0xff]   ;;  %282 = vperm.xlu0 %1018, %v260_v33   ;;  %292 = vperm.xlu1 %1019, %v262_v34  }
  0x14   : > { %v1043_v16 = vld [vmem:[%s1149_s19 + $0x88] ss:$16 sps:$4 sm:$0xff]   ;;  %v1044_v17 = vld [vmem:[%s1149_s19 + $0x64] ss:$16 sps:$4 sm:$0xff]   ;;  %v1046_v18 = vld [vmem:[%s1149_s19 + $0x6c] ss:$16 sps:$4 sm:$0xff]  }
  0x15   : > { %566 = vmatpush1.bf16.msra.mxu0 %v1030_v7  ;;  %679 = vmatpush1.bf16.msra.mxu1 %v1031_v8  ;;  %v1048_v19 = vld [vmem:[%s1149_s19 + $0x60] ss:$16 sps:$4 sm:$0xff]   ;;  %v1049_v20 = vld [vmem:[%s1149_s19 + $0x68] ss:$16 sps:$4 sm:$0xff]   ;;  %v1050_v21 = vld [vmem:[%s1149_s19 + $0x44] ss:$16 sps:$4 sm:$0xff]  }
  0x16   : > { %567 = vmatprep.subr.bf16.mxu0 %v1032_v9  ;;  %680 = vmatprep.subr.bf16.mxu1 %v1034_v10  ;;  %v1052_v22 = vld [vmem:[%s1149_s19 + $0x4c] ss:$16 sps:$4 sm:$0xff]   ;;  %v1054_v23 = vld [vmem:[%s1149_s19 + $0x40] ss:$16 sps:$4 sm:$0xff]   ;;  %v1055_v24 = vld [vmem:[%s1149_s19 + $0x48] ss:$16 sps:$4 sm:$0xff]  }
  0x17   : > { %v1056_v25 = vld [vmem:[%s1149_s19 + $0x24] ss:$16 sps:$4 sm:$0xff]   ;;  %v1058_v26 = vld [vmem:[%s1149_s19 + $0x2c] ss:$16 sps:$4 sm:$0xff]   ;;  %v1060_v28 = vld [vmem:[%s1149_s19 + $0x20] ss:$16 sps:$4 sm:$0xff]   ;;  %302 = vperm.xlu1 %1019, %v264_v38   ;;  %297 = vperm.xlu0 %1018, %v263_v39  }
  0x18   : > { %v1061_v29 = vld [vmem:[%s1149_s19 + $0x28] ss:$16 sps:$4 sm:$0xff]   ;;  %v1062_v31 = vld [vmem:[%s1149_s19 + $0x4] ss:$16 sps:$4 sm:$0xff]   ;;  %v1064_v32 = vld [vmem:[%s1149_s19 + $0xc] ss:$16 sps:$4 sm:$0xff]  }
  0x19   : > { %568 = vmatpush1.bf16.msra.mxu0 %v1036_v11  ;;  %681 = vmatpush1.bf16.msra.mxu1 %v1037_v12  ;;  %v1066_v35 = vld [vmem:[%s1149_s19] ss:$16 sps:$4 sm:$0xff]   ;;  %v1067_v36 = vld [vmem:[%s1149_s19 + $0x8] ss:$16 sps:$4 sm:$0xff]  }
  0x1a   : > { %569 = vmatprep.subr.bf16.mxu0 %v1038_v13  ;;  %682 = vmatprep.subr.bf16.mxu1 %v1040_v14  ;;  %v1069_v42 = vld [vmem:[%s1349_s1 + $0x8] sm:$0xff]   ;;  %v267_v44 = vld [vmem:[%s1350_s2 + $0x40] sm:$0xff]  ;;  %v270_v45 = vld [vmem:[%s1350_s2 + $0x58] sm:$0xff] }
  0x1b   : > { %312 = vperm.xlu1 %1019, %v266_v40   ;;  %307 = vperm.xlu0 %1018, %v265_v41   ;;  %v268_v43 = vld [vmem:[%s1350_s2 + $0x48] sm:$0xff]  ;;  %v269_v46 = vld [vmem:[%s1350_s2 + $0x50] sm:$0xff]  ;;  %v271_v49 = vld [vmem:[%s1350_s2 + $0x60] sm:$0xff] }
  0x1c   : > { %v1070_v47 = vld [vmem:[%s1349_s1 + $0x10] sm:$0xff]   ;;  %v272_v48 = vld [vmem:[%s1350_s2 + $0x68] sm:$0xff]  ;;  %v274_v50 = vld [vmem:[%s1350_s2 + $0x78] sm:$0xff] }
  0x1d   : > { %570 = vmatpush1.bf16.msra.mxu0 %v1042_v15  ;;  %683 = vmatpush1.bf16.msra.mxu1 %v1043_v16  ;;  %v273_v51 = vld [vmem:[%s1350_s2 + $0x70] sm:$0xff]  ;;  %v1071_v52 = vld [vmem:[%s1349_s1 + $0x18] sm:$0xff]   ;;  %v1072_v53 = vld [vmem:[%s1349_s1 + $0x20] sm:$0xff]  }
  0x1e   : > { %571 = vmatprep.subr.bf16.mxu0 %v1044_v17  ;;  %684 = vmatprep.subr.bf16.mxu1 %v1046_v18  ;;  %v1073_v54 = vld [vmem:[%s1349_s1 + $0x28] sm:$0xff]   ;;  %v1074_v55 = vld [vmem:[%s1349_s1 + $0x30] sm:$0xff]   ;;  %v1075_v56 = vld [vmem:[%s1349_s1 + $0x38] sm:$0xff]  }
  0x1f   : > { %322 = vperm.xlu1 %1019, %v268_v43   ;;  %317 = vperm.xlu0 %1018, %v267_v44  }
  0x21   : > { %572 = vmatpush1.bf16.msra.mxu0 %v1048_v19  ;;  %685 = vmatpush1.bf16.msra.mxu1 %v1049_v20 }
  0x22   : > { %573 = vmatprep.subr.bf16.mxu0 %v1050_v21  ;;  %686 = vmatprep.subr.bf16.mxu1 %v1052_v22 }
  0x23   : > { %332 = vperm.xlu1 %1019, %v270_v45   ;;  %327 = vperm.xlu0 %1018, %v269_v46  }
  0x25   : > { %574 = vmatpush1.bf16.msra.mxu0 %v1054_v23  ;;  %687 = vmatpush1.bf16.msra.mxu1 %v1055_v24 }
  0x26   : > { %575 = vmatprep.subr.bf16.mxu0 %v1056_v25  ;;  %688 = vmatprep.subr.bf16.mxu1 %v1058_v26 }
  0x27   : > { %342 = vperm.xlu1 %1019, %v272_v48   ;;  %337 = vperm.xlu0 %1018, %v271_v49  }
  0x29   : > { %576 = vmatpush1.bf16.msra.mxu0 %v1060_v28  ;;  %689 = vmatpush1.bf16.msra.mxu1 %v1061_v29 }
  0x2a   : > { %577 = vmatprep.subr.bf16.mxu0 %v1062_v31  ;;  %690 = vmatprep.subr.bf16.mxu1 %v1064_v32 }
  0x2b   : > { %352 = vperm.xlu1 %1019, %v274_v50   ;;  %347 = vperm.xlu0 %1018, %v273_v51  }
  0x2d   : > { %578 = vmatpush1.bf16.msra.mxu0 %v1066_v35  ;;  %691 = vmatpush1.bf16.msra.mxu1 %v1067_v36 }
  0x30   : > { %596 = vmatmul.mubr.bf16.vlgmr.msra.gmra.mxu0 %v1068_v37  ;;  %709 = vmatmul.mubr.bf16.vlgmr.msra.gmra.mxu1 %v1068_v37 }
  0x31   : > { %605 = vmatprep.mubr.bf16.mxu0 %v1100_v0  ;;  %718 = vmatprep.mubr.bf16.mxu1 %v1100_v0 }
  0x38   : > { %606 = vmatmul.mubr.bf16.gmra.mxu0 %v1069_v42  ;;  %719 = vmatmul.mubr.bf16.gmra.mxu1 %v1069_v42 }
  0x39   : > { %615 = vmatprep.mubr.bf16.mxu0 %v1100_v0  ;;  %728 = vmatprep.mubr.bf16.mxu1 %v1100_v0 }
  0x40   : > { %616 = vmatmul.mubr.bf16.gmra.mxu0 %v1070_v47  ;;  %729 = vmatmul.mubr.bf16.gmra.mxu1 %v1070_v47 }
  0x41   : > { %625 = vmatprep.mubr.bf16.mxu0 %v1100_v0  ;;  %738 = vmatprep.mubr.bf16.mxu1 %v1100_v0 }
  0x48   : > { %626 = vmatmul.mubr.bf16.gmra.mxu0 %v1071_v52  ;;  %739 = vmatmul.mubr.bf16.gmra.mxu1 %v1071_v52 }
  0x49   : > { %635 = vmatprep.mubr.bf16.mxu0 %v1100_v0  ;;  %748 = vmatprep.mubr.bf16.mxu1 %v1100_v0 }
  0x50   : > { %636 = vmatmul.mubr.bf16.gmra.mxu0 %v1072_v53  ;;  %749 = vmatmul.mubr.bf16.gmra.mxu1 %v1072_v53 }
  0x51   : > { %645 = vmatprep.mubr.bf16.mxu0 %v1100_v0  ;;  %758 = vmatprep.mubr.bf16.mxu1 %v1100_v0 }
  0x58   : > { %646 = vmatmul.mubr.bf16.gmra.mxu0 %v1073_v54  ;;  %759 = vmatmul.mubr.bf16.gmra.mxu1 %v1073_v54 }
  0x59   : > { %655 = vmatprep.mubr.bf16.mxu0 %v1100_v0  ;;  %768 = vmatprep.mubr.bf16.mxu1 %v1100_v0 }
  0x60   : > { %656 = vmatmul.mubr.bf16.gmra.mxu0 %v1074_v55  ;;  %769 = vmatmul.mubr.bf16.gmra.mxu1 %v1074_v55 }
  0x61   : > { %665 = vmatprep.mubr.bf16.mxu0 %v1100_v0  ;;  %778 = vmatprep.mubr.bf16.mxu1 %v1100_v0 }
  0x68   : > { %666 = vmatmul.mubr.bf16.gmra.mxu0 %v1075_v56  ;;  %779 = vmatmul.mubr.bf16.gmra.mxu1 %v1075_v56 }
  0x8a   : > { %v278_v57 = vpop.permute.xlu0 %277  ;;  %v288_v7 = vpop.permute.xlu1 %287 }
  0x8e   : > { %v283_v62 = vpop.permute.xlu0 %282  ;;  %v293_v18 = vpop.permute.xlu1 %292 }
  0x92   : > { %v298_v27 = vpop.permute.xlu0 %297  ;;  %v303_v36 = vpop.permute.xlu1 %302 }
  0x96   : > { %v308_v45 = vpop.permute.xlu0 %307  ;;  %v313_v54 = vpop.permute.xlu1 %312 }
  0xf0   : > { %v597_v58 = vpop.f32.mrf.mxu0  ;;  %v710_v59 = vpop.f32.mrf.mxu1 }
  0xf1   : > { %v598_v60 = vadd.f32 %v597_v58, %v278_v57  ;;  %v711_v61 = vadd.f32 %v710_v59, %v278_v57 }
  0xf2   : > { %v599_v63 = vpop.f32.mrf.mxu0  ;;  %v712_v0 = vpop.f32.mrf.mxu1 }
  0xf3   : > { %789 = vst [vmem:[%s1273_s25] sm:$0xff] %v598_v60  ;;  %791 = vst [vmem:[%s1273_s25 + $0x10] sm:$0xff] %v711_v61  ;;  %v600_v1 = vadd.f32 %v599_v63, %v278_v57  ;;  %v713_v2 = vadd.f32 %v712_v0, %v278_v57  ;;  %v318_v63 = vpop.permute.xlu0 %317 }
  0xf4   : > { %v601_v3 = vpop.f32.mrf.mxu0  ;;  %v714_v4 = vpop.f32.mrf.mxu1 }
  0xf5   : > { %790 = vst [vmem:[%s1273_s25 + $0x8] sm:$0xff] %v600_v1  ;;  %792 = vst [vmem:[%s1273_s25 + $0x18] sm:$0xff] %v713_v2  ;;  %v602_v5 = vadd.f32 %v601_v3, %v283_v62  ;;  %v715_v6 = vadd.f32 %v714_v4, %v283_v62 }
  0xf6   : > { %v603_v8 = vpop.f32.mrf.mxu0  ;;  %v716_v9 = vpop.f32.mrf.mxu1 }
  0xf7   : > { %793 = vst [vmem:[%s1273_s25 + $0x20] sm:$0xff] %v602_v5  ;;  %795 = vst [vmem:[%s1273_s25 + $0x30] sm:$0xff] %v715_v6  ;;  %v604_v10 = vadd.f32 %v603_v8, %v283_v62  ;;  %v717_v11 = vadd.f32 %v716_v9, %v283_v62  ;;  %v323_v8 = vpop.permute.xlu1 %322 }
  0xf8   : > { %v607_v12 = vpop.f32.mrf.mxu0  ;;  %v720_v13 = vpop.f32.mrf.mxu1 }
  0xf9   : > { %794 = vst [vmem:[%s1273_s25 + $0x28] sm:$0xff] %v604_v10  ;;  %796 = vst [vmem:[%s1273_s25 + $0x38] sm:$0xff] %v717_v11  ;;  %v608_v14 = vadd.f32 %v607_v12, %v288_v7  ;;  %v721_v15 = vadd.f32 %v720_v13, %v288_v7 }
  0xfa   : > { %v609_v16 = vpop.f32.mrf.mxu0  ;;  %v722_v17 = vpop.f32.mrf.mxu1 }
  0xfb   : > { %797 = vst [vmem:[%s1273_s25 + $0x40] sm:$0xff] %v608_v14  ;;  %799 = vst [vmem:[%s1273_s25 + $0x50] sm:$0xff] %v721_v15  ;;  %v610_v19 = vadd.f32 %v609_v16, %v288_v7  ;;  %v723_v20 = vadd.f32 %v722_v17, %v288_v7  ;;  %v328_v17 = vpop.permute.xlu0 %327 }
  0xfc   : > { %v611_v21 = vpop.f32.mrf.mxu0  ;;  %v724_v22 = vpop.f32.mrf.mxu1 }
  0xfd   : > { %798 = vst [vmem:[%s1273_s25 + $0x48] sm:$0xff] %v610_v19  ;;  %800 = vst [vmem:[%s1273_s25 + $0x58] sm:$0xff] %v723_v20  ;;  %v612_v23 = vadd.f32 %v611_v21, %v293_v18  ;;  %v725_v24 = vadd.f32 %v724_v22, %v293_v18 }
  0xfe   : > { %v613_v25 = vpop.f32.mrf.mxu0  ;;  %v726_v26 = vpop.f32.mrf.mxu1 }
  0xff   : > { %801 = vst [vmem:[%s1273_s25 + $0x60] sm:$0xff] %v612_v23  ;;  %803 = vst [vmem:[%s1273_s25 + $0x70] sm:$0xff] %v725_v24  ;;  %v614_v28 = vadd.f32 %v613_v25, %v293_v18  ;;  %v727_v29 = vadd.f32 %v726_v26, %v293_v18  ;;  %v333_v26 = vpop.permute.xlu1 %332 }
 0x100   : > { %v617_v30 = vpop.f32.mrf.mxu0  ;;  %v730_v31 = vpop.f32.mrf.mxu1 }
 0x101   : > { %802 = vst [vmem:[%s1273_s25 + $0x68] sm:$0xff] %v614_v28  ;;  %804 = vst [vmem:[%s1273_s25 + $0x78] sm:$0xff] %v727_v29  ;;  %v618_v32 = vadd.f32 %v617_v30, %v298_v27  ;;  %v731_v33 = vadd.f32 %v730_v31, %v298_v27 }
 0x102   : > { %v619_v34 = vpop.f32.mrf.mxu0  ;;  %v732_v35 = vpop.f32.mrf.mxu1 }
 0x103   : > { %805 = vst [vmem:[%s1273_s25 + $0x80] sm:$0xff] %v618_v32  ;;  %807 = vst [vmem:[%s1273_s25 + $0x90] sm:$0xff] %v731_v33  ;;  %v620_v37 = vadd.f32 %v619_v34, %v298_v27  ;;  %v733_v38 = vadd.f32 %v732_v35, %v298_v27  ;;  %v338_v35 = vpop.permute.xlu0 %337 }
 0x104   : > { %v621_v39 = vpop.f32.mrf.mxu0  ;;  %v734_v40 = vpop.f32.mrf.mxu1 }
 0x105   : > { %806 = vst [vmem:[%s1273_s25 + $0x88] sm:$0xff] %v620_v37  ;;  %808 = vst [vmem:[%s1273_s25 + $0x98] sm:$0xff] %v733_v38  ;;  %v622_v41 = vadd.f32 %v621_v39, %v303_v36  ;;  %v735_v42 = vadd.f32 %v734_v40, %v303_v36 }
 0x106   : > { %v623_v43 = vpop.f32.mrf.mxu0  ;;  %v736_v44 = vpop.f32.mrf.mxu1 }
 0x107   : > { %809 = vst [vmem:[%s1273_s25 + $0xa0] sm:$0xff] %v622_v41  ;;  %811 = vst [vmem:[%s1273_s25 + $0xb0] sm:$0xff] %v735_v42  ;;  %v624_v46 = vadd.f32 %v623_v43, %v303_v36  ;;  %v737_v47 = vadd.f32 %v736_v44, %v303_v36  ;;  %v343_v44 = vpop.permute.xlu1 %342 }
 0x108   : > { %v627_v48 = vpop.f32.mrf.mxu0  ;;  %v740_v49 = vpop.f32.mrf.mxu1 }
 0x109   : > { %810 = vst [vmem:[%s1273_s25 + $0xa8] sm:$0xff] %v624_v46  ;;  %812 = vst [vmem:[%s1273_s25 + $0xb8] sm:$0xff] %v737_v47  ;;  %v628_v50 = vadd.f32 %v627_v48, %v308_v45  ;;  %v741_v51 = vadd.f32 %v740_v49, %v308_v45 }
 0x10a   : > { %v629_v52 = vpop.f32.mrf.mxu0  ;;  %v742_v53 = vpop.f32.mrf.mxu1 }
 0x10b   : > { %813 = vst [vmem:[%s1273_s25 + $0xc0] sm:$0xff] %v628_v50  ;;  %815 = vst [vmem:[%s1273_s25 + $0xd0] sm:$0xff] %v741_v51  ;;  %v630_v55 = vadd.f32 %v629_v52, %v308_v45  ;;  %v743_v56 = vadd.f32 %v742_v53, %v308_v45  ;;  %v348_v53 = vpop.permute.xlu0 %347 }
 0x10c   : > { %v631_v57 = vpop.f32.mrf.mxu0  ;;  %v744_v58 = vpop.f32.mrf.mxu1 }
 0x10d   : > { %814 = vst [vmem:[%s1273_s25 + $0xc8] sm:$0xff] %v630_v55  ;;  %816 = vst [vmem:[%s1273_s25 + $0xd8] sm:$0xff] %v743_v56  ;;  %v632_v59 = vadd.f32 %v631_v57, %v313_v54  ;;  %v745_v60 = vadd.f32 %v744_v58, %v313_v54 }
 0x10e   : > { %v633_v61 = vpop.f32.mrf.mxu0  ;;  %v746_v62 = vpop.f32.mrf.mxu1 }
 0x10f   : > { %817 = vst [vmem:[%s1273_s25 + $0xe0] sm:$0xff] %v632_v59  ;;  %819 = vst [vmem:[%s1273_s25 + $0xf0] sm:$0xff] %v745_v60  ;;  %v634_v0 = vadd.f32 %v633_v61, %v313_v54  ;;  %v747_v1 = vadd.f32 %v746_v62, %v313_v54  ;;  %v353_v62 = vpop.permute.xlu1 %352 }
 0x110   : > { %v637_v2 = vpop.f32.mrf.mxu0  ;;  %v750_v3 = vpop.f32.mrf.mxu1 }
 0x111   : > { %818 = vst [vmem:[%s1273_s25 + $0xe8] sm:$0xff] %v634_v0  ;;  %820 = vst [vmem:[%s1273_s25 + $0xf8] sm:$0xff] %v747_v1  ;;  %v638_v4 = vadd.f32 %v637_v2, %v318_v63  ;;  %v751_v5 = vadd.f32 %v750_v3, %v318_v63 }
 0x112   : > { %v639_v6 = vpop.f32.mrf.mxu0  ;;  %v752_v7 = vpop.f32.mrf.mxu1 }
 0x113   : > { %821 = vst [vmem:[%s1273_s25 + $0x100] sm:$0xff] %v638_v4  ;;  %823 = vst [vmem:[%s1273_s25 + $0x110] sm:$0xff] %v751_v5  ;;  %v640_v9 = vadd.f32 %v639_v6, %v318_v63  ;;  %v753_v10 = vadd.f32 %v752_v7, %v318_v63 }
 0x114   : > { %v641_v11 = vpop.f32.mrf.mxu0  ;;  %v754_v12 = vpop.f32.mrf.mxu1 }
 0x115   : > { %822 = vst [vmem:[%s1273_s25 + $0x108] sm:$0xff] %v640_v9  ;;  %824 = vst [vmem:[%s1273_s25 + $0x118] sm:$0xff] %v753_v10  ;;  %v642_v13 = vadd.f32 %v641_v11, %v323_v8  ;;  %v755_v14 = vadd.f32 %v754_v12, %v323_v8 }
 0x116   : > { %v643_v15 = vpop.f32.mrf.mxu0  ;;  %v756_v16 = vpop.f32.mrf.mxu1 }
 0x117   : > { %825 = vst [vmem:[%s1273_s25 + $0x120] sm:$0xff] %v642_v13  ;;  %827 = vst [vmem:[%s1273_s25 + $0x130] sm:$0xff] %v755_v14  ;;  %v644_v18 = vadd.f32 %v643_v15, %v323_v8  ;;  %v757_v19 = vadd.f32 %v756_v16, %v323_v8 }
 0x118   : > { %v647_v20 = vpop.f32.mrf.mxu0  ;;  %v760_v21 = vpop.f32.mrf.mxu1 }
 0x119   : > { %826 = vst [vmem:[%s1273_s25 + $0x128] sm:$0xff] %v644_v18  ;;  %828 = vst [vmem:[%s1273_s25 + $0x138] sm:$0xff] %v757_v19  ;;  %v648_v22 = vadd.f32 %v647_v20, %v328_v17  ;;  %v761_v23 = vadd.f32 %v760_v21, %v328_v17 }
 0x11a   : > { %v649_v24 = vpop.f32.mrf.mxu0  ;;  %v762_v25 = vpop.f32.mrf.mxu1 }
 0x11b   : > { %829 = vst [vmem:[%s1273_s25 + $0x140] sm:$0xff] %v648_v22  ;;  %831 = vst [vmem:[%s1273_s25 + $0x150] sm:$0xff] %v761_v23  ;;  %v650_v27 = vadd.f32 %v649_v24, %v328_v17  ;;  %v763_v28 = vadd.f32 %v762_v25, %v328_v17 }
 0x11c   : > { %v651_v29 = vpop.f32.mrf.mxu0  ;;  %v764_v30 = vpop.f32.mrf.mxu1 }
 0x11d   : > { %830 = vst [vmem:[%s1273_s25 + $0x148] sm:$0xff] %v650_v27  ;;  %832 = vst [vmem:[%s1273_s25 + $0x158] sm:$0xff] %v763_v28  ;;  %v652_v31 = vadd.f32 %v651_v29, %v333_v26  ;;  %v765_v32 = vadd.f32 %v764_v30, %v333_v26 }
 0x11e   : > { %v653_v33 = vpop.f32.mrf.mxu0  ;;  %v766_v34 = vpop.f32.mrf.mxu1 }
 0x11f   : > { %833 = vst [vmem:[%s1273_s25 + $0x160] sm:$0xff] %v652_v31  ;;  %835 = vst [vmem:[%s1273_s25 + $0x170] sm:$0xff] %v765_v32  ;;  %v654_v36 = vadd.f32 %v653_v33, %v333_v26  ;;  %v767_v37 = vadd.f32 %v766_v34, %v333_v26 }
 0x120   : > { %v657_v38 = vpop.f32.mrf.mxu0  ;;  %v770_v39 = vpop.f32.mrf.mxu1 }
 0x121   : > { %834 = vst [vmem:[%s1273_s25 + $0x168] sm:$0xff] %v654_v36  ;;  %836 = vst [vmem:[%s1273_s25 + $0x178] sm:$0xff] %v767_v37  ;;  %v658_v40 = vadd.f32 %v657_v38, %v338_v35  ;;  %v771_v41 = vadd.f32 %v770_v39, %v338_v35 }
 0x122   : > { %v659_v42 = vpop.f32.mrf.mxu0  ;;  %v772_v43 = vpop.f32.mrf.mxu1 }
 0x123   : > { %837 = vst [vmem:[%s1273_s25 + $0x180] sm:$0xff] %v658_v40  ;;  %839 = vst [vmem:[%s1273_s25 + $0x190] sm:$0xff] %v771_v41  ;;  %v660_v45 = vadd.f32 %v659_v42, %v338_v35  ;;  %v773_v46 = vadd.f32 %v772_v43, %v338_v35 }
 0x124   : > { %v661_v47 = vpop.f32.mrf.mxu0  ;;  %v774_v48 = vpop.f32.mrf.mxu1 }
 0x125   : > { %838 = vst [vmem:[%s1273_s25 + $0x188] sm:$0xff] %v660_v45  ;;  %840 = vst [vmem:[%s1273_s25 + $0x198] sm:$0xff] %v773_v46  ;;  %v662_v49 = vadd.f32 %v661_v47, %v343_v44  ;;  %v775_v50 = vadd.f32 %v774_v48, %v343_v44 }
 0x126   : > { %v663_v51 = vpop.f32.mrf.mxu0  ;;  %v776_v52 = vpop.f32.mrf.mxu1 }
 0x127   : > { %841 = vst [vmem:[%s1273_s25 + $0x1a0] sm:$0xff] %v662_v49  ;;  %843 = vst [vmem:[%s1273_s25 + $0x1b0] sm:$0xff] %v775_v50  ;;  %v664_v54 = vadd.f32 %v663_v51, %v343_v44  ;;  %v777_v55 = vadd.f32 %v776_v52, %v343_v44 }
 0x128   : > { %v667_v56 = vpop.f32.mrf.mxu0  ;;  %v780_v57 = vpop.f32.mrf.mxu1 }
 0x129   : > { %842 = vst [vmem:[%s1273_s25 + $0x1a8] sm:$0xff] %v664_v54  ;;  %844 = vst [vmem:[%s1273_s25 + $0x1b8] sm:$0xff] %v777_v55  ;;  %v668_v58 = vadd.f32 %v667_v56, %v348_v53  ;;  %v781_v59 = vadd.f32 %v780_v57, %v348_v53 }
 0x12a   : > { %v669_v60 = vpop.f32.mrf.mxu0  ;;  %v782_v61 = vpop.f32.mrf.mxu1 }
 0x12b   : > { %845 = vst [vmem:[%s1273_s25 + $0x1c0] sm:$0xff] %v668_v58  ;;  %847 = vst [vmem:[%s1273_s25 + $0x1d0] sm:$0xff] %v781_v59  ;;  %v670_v63 = vadd.f32 %v669_v60, %v348_v53  ;;  %v783_v0 = vadd.f32 %v782_v61, %v348_v53 }
 0x12c   : > { %v671_v1 = vpop.f32.mrf.mxu0  ;;  %v784_v2 = vpop.f32.mrf.mxu1 }
 0x12d   : > { %846 = vst [vmem:[%s1273_s25 + $0x1c8] sm:$0xff] %v670_v63  ;;  %848 = vst [vmem:[%s1273_s25 + $0x1d8] sm:$0xff] %v783_v0  ;;  %v672_v3 = vadd.f32 %v671_v1, %v353_v62  ;;  %v785_v4 = vadd.f32 %v784_v2, %v353_v62 }
 0x12e   : > { %v673_v5 = vpop.f32.mrf.mxu0  ;;  %v786_v6 = vpop.f32.mrf.mxu1 }
 0x12f   : > { %849 = vst [vmem:[%s1273_s25 + $0x1e0] sm:$0xff] %v672_v3  ;;  %851 = vst [vmem:[%s1273_s25 + $0x1f0] sm:$0xff] %v785_v4  ;;  %v674_v7 = vadd.f32 %v673_v5, %v353_v62  ;;  %v787_v8 = vadd.f32 %v786_v6, %v353_v62 }
 0x131   : > { %850 = vst [vmem:[%s1273_s25 + $0x1e8] sm:$0xff] %v674_v7  ;;  %852 = vst [vmem:[%s1273_s25 + $0x1f8] sm:$0xff] %v787_v8 }
 0x132 PF: > { %s13_s14 = sadd.s32 1, %s1098_s14   ;;  %s1352_s12 = smov %s1094_s13 }
 0x133   : > { %p10_p5 = scmp.ge.s32.totalorder %s13_s14, 4   ;;  %s1353_s13 = smov %s1355_s15 }
 0x135   :  { %12 = sbr.rel (!%p10_p5) target bundleno = 2 (0x2), region = 62 }

</bundles_post_ra>
